<compile_context>
chip_gen: v7x
topology: tpu7x:2x2x1
jax: 0.10.0
libtpu: 0.0.40
codegen_flags: <defaults>
</compile_context>

<pallas_src>
import functools

import jax
import jax.numpy as jnp
from jax.experimental import pallas as pl
from jax.experimental.pallas import tpu as pltpu

_EPS = 1e-5  # nn.InstanceNorm2d default eps


# ---------------------------------------------------------------------------
# One-time weight preprocessing (hoisted out of the per-call path).
# ---------------------------------------------------------------------------
def _banded_fused(w_hwio, W, *, ci_pad=None, co_pad=None, dtype=jnp.float32):
    """(3,3,Ci,Co) HWIO kernel -> (3*W*Ci, W*Co) fused banded matrix.

    With activations laid out as rows of width W*Ci (x-major, channel-minor)
    and the matmul LHS built as [row(y-1) | row(y) | row(y+1)] on the lane
    axis, a single matmul against this matrix is the full 3x3 'same' conv:
    the band (zero outside |xin - x| <= 1) gives horizontal padding, the three
    stacked blocks give the vertical taps.
    """
    kh, kw, Ci, Co = w_hwio.shape
    w = w_hwio.astype(jnp.float32)
    if ci_pad is not None and ci_pad > Ci:       # phantom input channels
        w = jnp.pad(w, ((0, 0), (0, 0), (0, ci_pad - Ci), (0, 0)))
        Ci = ci_pad
    if co_pad is not None and co_pad > Co:       # phantom output channels
        w = jnp.pad(w, ((0, 0), (0, 0), (0, 0), (0, co_pad - Co)))
        Co = co_pad
    # bands[dx, xin, x] = 1 iff xin == x + dx - 1   (horizontal 'same' pad)
    bands = jnp.stack(
        [jnp.eye(W, k=1 - dx, dtype=jnp.float32) for dx in range(kw)], axis=0)
    wb = jnp.einsum("xab,yxio->yaibo", bands, w)            # (kh, W, Ci, W, Co)
    return wb.reshape(kh * W * Ci, W * Co).astype(dtype)


def prepare_params(w1_hwio, w2_hwio, w3_hwio, H, W):
    """Build the static kernel operands once (the module weights are static)."""
    Cin, Co = w1_hwio.shape[2], w1_hwio.shape[3]
    Ch = w2_hwio.shape[3]
    assert Cin == Co, "residual add requires in_ch == out_ch"
    assert w2_hwio.shape[2] == Co
    assert w3_hwio.shape[2] == Ch and w3_hwio.shape[3] == Co
    # conv1/conv2 in bf16 (re-normalized by the InstanceNorms); conv3 in f32.
    wb1 = _banded_fused(w1_hwio, W, dtype=jnp.bfloat16)
    # Ch is zero-padded to Co so every stage runs with the same W*Co lane
    # width (full-lane stores, one scratch layout); phantom channels stay 0.
    wb2 = _banded_fused(w2_hwio, W, co_pad=Co, dtype=jnp.bfloat16)
    wb3 = _banded_fused(w3_hwio, W, ci_pad=Co, dtype=jnp.float32)
    # Channel-mean matrix: (col @ m)[w*C + c] = mean over H*W of channel c,
    # i.e. per-channel gather AND broadcast back over lanes in one matmul.
    m = jnp.tile(jnp.eye(Co, dtype=jnp.float32), (W, W)) / float(H * W)
    return wb1, wb2, wb3, m


# ---------------------------------------------------------------------------
# Kernel
# ---------------------------------------------------------------------------
def _residual_conv_kernel(x_ref, wb1_ref, wb2_ref, wb3_ref, m_ref, o_ref,
                          sa_ref, sb_ref, *, H, S, N):
    """conv1->IN->ELU->conv2->IN->ELU->conv3 (+residual) for the whole batch.

    Scratch layout: sample n owns rows [n*S, (n+1)*S) (S multiple of 8,
    >= H+2); its data lives at rows n*S+1 .. n*S+H, all other rows stay zero
    and act as the vertical 'same' padding.  Each conv is then a single
    (N*S, 3*W*C) @ (3*W*C, W*C) matmul over the stacked batch.
    """
    Ru = N * S                     # rows of conv output actually computed
    f32 = jnp.float32

    # Zero the scratches once: padding rows/lanes stay zero for every stage.
    sa_ref[...] = jnp.zeros_like(sa_ref)
    sb_ref[...] = jnp.zeros_like(sb_ref)

    # Stack + vertically pad the batch into the bf16 conv-1 LHS.
    for n in range(N):
        sa_ref[n * S + 1:n * S + 1 + H, :] = x_ref[n].astype(jnp.bfloat16)

    def conv(x_all, wb_ref):
        # Y[r] = sum_dy Xpad[r + dy] @ Wb[dy], fused into ONE matmul with
        # K = 3*W*C: lane-axis concat of the three row-shifted views (lane
        # offsets are multiples of W*C, so the concat is tile-aligned).
        lhs = jnp.concatenate(
            [x_all[0:Ru], x_all[1:Ru + 1], x_all[2:Ru + 2]], axis=1)
        return jnp.dot(lhs, wb_ref[...], preferred_element_type=f32)

    def inelu_into(y, dst_ref, dst_dtype):
        # Per-sample InstanceNorm2d(affine=False) + ELU, written back into the
        # padded scratch layout for the next conv (no concatenate re-pads).
        for n in range(N):
            ys = y[n * S:n * S + H]                                  # (H, W*C)
            col = jnp.concatenate(
                [jnp.sum(ys, axis=0, keepdims=True),
                 jnp.sum(ys * ys, axis=0, keepdims=True)], axis=0)   # (2, W*C)
            # One small matmul gathers the per-channel sums and broadcasts the
            # result back over the interleaved (w, c) lane axis.
            full = jnp.dot(col, m_ref[...], preferred_element_type=f32)
            mu = full[0:1]
            var = jnp.maximum(full[1:2] - mu * mu, 0.0)    # one-pass, biased
            inv = jax.lax.rsqrt(var + _EPS)
            yn = (ys - mu) * inv
            h = jnp.where(yn > 0, yn, jnp.exp(jnp.minimum(yn, 0.0)) - 1.0)
            dst_ref[n * S + 1:n * S + 1 + H, :] = h.astype(dst_dtype)

    y1 = conv(sa_ref[...], wb1_ref)           # conv1  (bf16 MXU)
    inelu_into(y1, sa_ref, jnp.bfloat16)      # h1 -> sa (conv2 LHS)

    y2 = conv(sa_ref[...], wb2_ref)           # conv2  (bf16 MXU, Ch padded)
    inelu_into(y2, sb_ref, jnp.float32)       # h2 -> sb (conv3 LHS, f32)

    y3 = conv(sb_ref[...], wb3_ref)           # conv3  (f32)
    for n in range(N):                        # + residual
        o_ref[n] = x_ref[n] + y3[n * S:n * S + H]


# ---------------------------------------------------------------------------
# Per-call wrapper (jitted; only layout plumbing around the pallas_call)
# ---------------------------------------------------------------------------
@jax.jit
def residual_conv(x_nchw, wb1, wb2, wb3, m):
    """Forward pass of Residual_Conv.  x: (N, C, H, W) f32, params from
    prepare_params.  Returns (N, C, H, W) f32."""
    N, C, H, W = x_nchw.shape
    WC = W * C
    S = -(-(H + 2) // 8) * 8          # per-sample row stride, multiple of 8

    # NCHW -> lane-dense rows (N, H, W*C); vertical padding happens in-kernel.
    x_rows = jnp.transpose(x_nchw, (0, 2, 3, 1)).reshape(N, H, WC)
    x_rows = x_rows.astype(jnp.float32)

    out_rows = pl.pallas_call(
        functools.partial(_residual_conv_kernel, H=H, S=S, N=N),
        out_shape=jax.ShapeDtypeStruct((N, H, WC), jnp.float32),
        grid_spec=pltpu.PrefetchScalarGridSpec(
            num_scalar_prefetch=0,
            grid=(1,),                # whole (tiny) batch in one grid step
            in_specs=[
                pl.BlockSpec((N, H, WC), lambda i: (0, 0, 0)),
                pl.BlockSpec(wb1.shape, lambda i: (0, 0)),
                pl.BlockSpec(wb2.shape, lambda i: (0, 0)),
                pl.BlockSpec(wb3.shape, lambda i: (0, 0)),
                pl.BlockSpec(m.shape, lambda i: (0, 0)),
            ],
            out_specs=pl.BlockSpec((N, H, WC), lambda i: (0, 0, 0)),
            scratch_shapes=[
                # +8 slack rows so every shifted conv view has full length.
                pltpu.VMEM((N * S + 8, WC), jnp.bfloat16),   # conv1/2 LHS
                pltpu.VMEM((N * S + 8, WC), jnp.float32),    # conv3 LHS
            ],
        ),
        compiler_params=pltpu.CompilerParams(
            dimension_semantics=("arbitrary",)),
    )(x_rows, wb1, wb2, wb3, m)

    out = out_rows.reshape(N, H, W, C)
    return jnp.transpose(out, (0, 3, 1, 2))


# ---------------------------------------------------------------------------
# Pure-JAX reference (matches PyTorch Residual_Conv semantics, f32)
# ---------------------------------------------------------------------------
def _reference(x_nchw, w1, w2, w3):
    x = jnp.transpose(x_nchw, (0, 2, 3, 1))

    def conv(inp, w):
        return jax.lax.conv_general_dilated(
            inp, w, window_strides=(1, 1), padding="SAME",
            dimension_numbers=("NHWC", "HWIO", "NHWC"))

    def inelu(y):
        mu = jnp.mean(y, axis=(1, 2), keepdims=True)
        var = jnp.mean(jnp.square(y - mu), axis=(1, 2), keepdims=True)
        yn = (y - mu) * jax.lax.rsqrt(var + _EPS)
        return jnp.where(yn > 0, yn, jnp.exp(jnp.minimum(yn, 0.0)) - 1.0)

    h1 = inelu(conv(x, w1))
    h2 = inelu(conv(h1, w2))
    out = x + conv(h2, w3)
    return jnp.transpose(out, (0, 3, 1, 2))


if __name__ == "__main__":
    # Residual_Conv(in_ch=8, out_ch=8): conv1 8->8, conv2 8->4, conv3 4->8.
    N, Cin, H, W = 2, 8, 16, 16
    Co, Ch = 8, 4  # out_ch, out_ch // 2

    key = jax.random.PRNGKey(0)
    kx, k1, k2, k3 = jax.random.split(key, 4)
    x = jax.random.normal(kx, (N, Cin, H, W), dtype=jnp.float32)
    # Deterministic synthetic weights (HWIO), bias=False as in the module.
    w1 = 0.1 * jax.random.normal(k1, (3, 3, Cin, Co), dtype=jnp.float32)
    w2 = 0.1 * jax.random.normal(k2, (3, 3, Co, Ch), dtype=jnp.float32)
    w3 = 0.1 * jax.random.normal(k3, (3, 3, Ch, Co), dtype=jnp.float32)

    params = prepare_params(w1, w2, w3, H, W)   # one-time, hoisted
    out = residual_conv(x, *params)
    out = jax.block_until_ready(out)

    ref = jax.block_until_ready(_reference(x, w1, w2, w3))
    assert out.shape == (N, Co, H, W)
    # conv1/conv2 feed the MXU with bf16 inputs (re-normalized by the
    # InstanceNorms); conv3 + residual are f32 -> bf16-appropriate tolerance.
    err = float(jnp.max(jnp.abs(out - ref)))
    assert err < 4e-2, f"max abs err {err}"

    print("KERNEL_OK")
</pallas_src>

<mosaic_0001>
module attributes {stable_mosaic.version = 11 : i64} {
  func.func @_residual_conv_kernel(%arg0: i32, %arg1: memref<2x16x128xf32, #tpu.memory_space<vmem>>, %arg2: memref<384x128xbf16, #tpu.memory_space<vmem>>, %arg3: memref<384x128xbf16, #tpu.memory_space<vmem>>, %arg4: memref<384x128xf32, #tpu.memory_space<vmem>>, %arg5: memref<128x128xf32, #tpu.memory_space<vmem>>, %arg6: memref<2x16x128xf32, #tpu.memory_space<vmem>>, %arg7: memref<56x128xbf16, #tpu.memory_space<vmem>>, %arg8: memref<56x128xf32, #tpu.memory_space<vmem>>) attributes {dimension_semantics = [#tpu.dimension_semantics<arbitrary>], iteration_bounds = array<i64: 1>, scalar_prefetch = 0 : i64, scratch_operands = 2 : i64, tpu.core_type = #tpu.core_type<tc>, window_params = [{pipeline_mode = #tpu.pipeline_mode<synchronous>, transform_indices = @transform_0, window_bounds = array<i64: 2, 16, 128>}, {pipeline_mode = #tpu.pipeline_mode<synchronous>, transform_indices = @transform_1, window_bounds = array<i64: 384, 128>}, {pipeline_mode = #tpu.pipeline_mode<synchronous>, transform_indices = @transform_2, window_bounds = array<i64: 384, 128>}, {pipeline_mode = #tpu.pipeline_mode<synchronous>, transform_indices = @transform_3, window_bounds = array<i64: 384, 128>}, {pipeline_mode = #tpu.pipeline_mode<synchronous>, transform_indices = @transform_4, window_bounds = array<i64: 128, 128>}, {pipeline_mode = #tpu.pipeline_mode<synchronous>, transform_indices = @transform_5, window_bounds = array<i64: 2, 16, 128>}]} {
    %cst = arith.constant 0.000000e+00 : bf16
    %0 = vector.broadcast %cst : bf16 to vector<56x128xbf16>
    %c0 = arith.constant 0 : index
    %c0_0 = arith.constant 0 : index
    %1 = vector.load %arg7[%c0, %c0_0] : memref<56x128xbf16, #tpu.memory_space<vmem>>, vector<56x128xbf16>
    tpu.vector_store %arg7[%c0, %c0_0], %0 {strides = array<i32>} : memref<56x128xbf16, #tpu.memory_space<vmem>>, vector<56x128xbf16>,
    %cst_1 = arith.constant 0.000000e+00 : f32
    %2 = vector.broadcast %cst_1 : f32 to vector<56x128xf32>
    %c0_2 = arith.constant 0 : index
    %c0_3 = arith.constant 0 : index
    %3 = vector.load %arg8[%c0_2, %c0_3] : memref<56x128xf32, #tpu.memory_space<vmem>>, vector<56x128xf32>
    tpu.vector_store %arg8[%c0_2, %c0_3], %2 {strides = array<i32>} : memref<56x128xf32, #tpu.memory_space<vmem>>, vector<56x128xf32>,
    %c0_4 = arith.constant 0 : index
    %c0_5 = arith.constant 0 : index
    %c0_6 = arith.constant 0 : index
    %4 = vector.load %arg1[%c0_4, %c0_5, %c0_6] : memref<2x16x128xf32, #tpu.memory_space<vmem>>, vector<1x16x128xf32>
    %5 = vector.shape_cast %4 : vector<1x16x128xf32> to vector<16x128xf32>
    %6 = arith.truncf %5 : vector<16x128xf32> to vector<16x128xbf16>
    %c1 = arith.constant 1 : index
    %c0_7 = arith.constant 0 : index
    %7 = vector.load %arg7[%c1, %c0_7] : memref<56x128xbf16, #tpu.memory_space<vmem>>, vector<16x128xbf16>
    tpu.vector_store %arg7[%c1, %c0_7], %6 {strides = array<i32>} : memref<56x128xbf16, #tpu.memory_space<vmem>>, vector<16x128xbf16>,
    %c1_8 = arith.constant 1 : index
    %c0_9 = arith.constant 0 : index
    %c0_10 = arith.constant 0 : index
    %8 = vector.load %arg1[%c1_8, %c0_9, %c0_10] : memref<2x16x128xf32, #tpu.memory_space<vmem>>, vector<1x16x128xf32>
    %9 = vector.shape_cast %8 : vector<1x16x128xf32> to vector<16x128xf32>
    %10 = arith.truncf %9 : vector<16x128xf32> to vector<16x128xbf16>
    %c25 = arith.constant 25 : index
    %c0_11 = arith.constant 0 : index
    %11 = vector.load %arg7[%c25, %c0_11] : memref<56x128xbf16, #tpu.memory_space<vmem>>, vector<16x128xbf16>
    tpu.vector_store %arg7[%c25, %c0_11], %10 {strides = array<i32>} : memref<56x128xbf16, #tpu.memory_space<vmem>>, vector<16x128xbf16>,
    %c0_12 = arith.constant 0 : index
    %c0_13 = arith.constant 0 : index
    %12 = vector.load %arg7[%c0_12, %c0_13] : memref<56x128xbf16, #tpu.memory_space<vmem>>, vector<56x128xbf16>
    %13 = vector.extract_strided_slice %12 {offsets = [0, 0], sizes = [48, 128], strides = [1, 1]} : vector<56x128xbf16> to vector<48x128xbf16>
    %14 = vector.extract_strided_slice %12 {offsets = [1, 0], sizes = [48, 128], strides = [1, 1]} : vector<56x128xbf16> to vector<48x128xbf16>
    %15 = vector.extract_strided_slice %12 {offsets = [2, 0], sizes = [48, 128], strides = [1, 1]} : vector<56x128xbf16> to vector<48x128xbf16>
    %16 = tpu.concatenate %13, %14, %15 in 1 : vector<48x128xbf16>, vector<48x128xbf16>, vector<48x128xbf16> -> vector<48x384xbf16>
    %c0_14 = arith.constant 0 : index
    %c0_15 = arith.constant 0 : index
    %17 = vector.load %arg2[%c0_14, %c0_15] : memref<384x128xbf16, #tpu.memory_space<vmem>>, vector<384x128xbf16>
    %cst_16 = arith.constant dense<0.000000e+00> : vector<48x128xf32>
    %18 = tpu.matmul %16, %17, %cst_16 {dimension_numbers = #tpu.dot_dimension_numbers<[1], [0], [0], [1], [0, 0, 1, 1], [], []>} : vector<48x384xbf16>, vector<384x128xbf16>, vector<48x128xf32> -> vector<48x128xf32>
    %19 = vector.extract_strided_slice %18 {offsets = [0, 0], sizes = [16, 128], strides = [1, 1]} : vector<48x128xf32> to vector<16x128xf32>
    %cst_17 = arith.constant dense<0.000000e+00> : vector<128xf32>
    %20 = vector.multi_reduction <add>, %19, %cst_17 [0] : vector<16x128xf32> to vector<128xf32>
    %21 = vector.shape_cast %20 : vector<128xf32> to vector<1x128xf32>
    %22 = arith.mulf %19, %19 : vector<16x128xf32>
    %cst_18 = arith.constant dense<0.000000e+00> : vector<128xf32>
    %23 = vector.multi_reduction <add>, %22, %cst_18 [0] : vector<16x128xf32> to vector<128xf32>
    %24 = vector.shape_cast %23 : vector<128xf32> to vector<1x128xf32>
    %25 = tpu.concatenate %21, %24 in 0 : vector<1x128xf32>, vector<1x128xf32> -> vector<2x128xf32>
    %c0_19 = arith.constant 0 : index
    %c0_20 = arith.constant 0 : index
    %26 = vector.load %arg5[%c0_19, %c0_20] : memref<128x128xf32, #tpu.memory_space<vmem>>, vector<128x128xf32>
    %cst_21 = arith.constant dense<0.000000e+00> : vector<2x128xf32>
    %27 = tpu.matmul %25, %26, %cst_21 {dimension_numbers = #tpu.dot_dimension_numbers<[1], [0], [0], [1], [0, 0, 1, 1], [], []>} : vector<2x128xf32>, vector<128x128xf32>, vector<2x128xf32> -> vector<2x128xf32>
    %28 = vector.extract_strided_slice %27 {offsets = [0, 0], sizes = [1, 128], strides = [1, 1]} : vector<2x128xf32> to vector<1x128xf32>
    %29 = vector.extract_strided_slice %27 {offsets = [1, 0], sizes = [1, 128], strides = [1, 1]} : vector<2x128xf32> to vector<1x128xf32>
    %30 = arith.mulf %28, %28 : vector<1x128xf32>
    %31 = arith.subf %29, %30 : vector<1x128xf32>
    %cst_22 = arith.constant 0.000000e+00 : f32
    %32 = vector.broadcast %cst_22 : f32 to vector<1x128xf32>
    %33 = arith.maximumf %31, %32 : vector<1x128xf32>
    %cst_23 = arith.constant 9.99999974E-6 : f32
    %34 = vector.broadcast %cst_23 : f32 to vector<1x128xf32>
    %35 = arith.addf %33, %34 : vector<1x128xf32>
    %36 = math.rsqrt %35 : vector<1x128xf32>
    %37 = vector.broadcast %28 : vector<1x128xf32> to vector<16x128xf32>
    %38 = arith.subf %19, %37 : vector<16x128xf32>
    %39 = vector.broadcast %36 : vector<1x128xf32> to vector<16x128xf32>
    %40 = arith.mulf %38, %39 : vector<16x128xf32>
    %cst_24 = arith.constant 0.000000e+00 : f32
    %41 = vector.broadcast %cst_24 : f32 to vector<16x128xf32>
    %42 = arith.cmpf ogt, %40, %41 : vector<16x128xf32>
    %cst_25 = arith.constant 0.000000e+00 : f32
    %43 = vector.broadcast %cst_25 : f32 to vector<16x128xf32>
    %44 = arith.minimumf %40, %43 : vector<16x128xf32>
    %45 = math.exp %44 : vector<16x128xf32>
    %cst_26 = arith.constant 1.000000e+00 : f32
    %46 = vector.broadcast %cst_26 : f32 to vector<16x128xf32>
    %47 = arith.subf %45, %46 : vector<16x128xf32>
    %48 = arith.select %42, %40, %47 : vector<16x128xi1>, vector<16x128xf32>
    %49 = arith.truncf %48 : vector<16x128xf32> to vector<16x128xbf16>
    %c1_27 = arith.constant 1 : index
    %c0_28 = arith.constant 0 : index
    %50 = vector.load %arg7[%c1_27, %c0_28] : memref<56x128xbf16, #tpu.memory_space<vmem>>, vector<16x128xbf16>
    tpu.vector_store %arg7[%c1_27, %c0_28], %49 {strides = array<i32>} : memref<56x128xbf16, #tpu.memory_space<vmem>>, vector<16x128xbf16>,
    %51 = vector.extract_strided_slice %18 {offsets = [24, 0], sizes = [16, 128], strides = [1, 1]} : vector<48x128xf32> to vector<16x128xf32>
    %cst_29 = arith.constant dense<0.000000e+00> : vector<128xf32>
    %52 = vector.multi_reduction <add>, %51, %cst_29 [0] : vector<16x128xf32> to vector<128xf32>
    %53 = vector.shape_cast %52 : vector<128xf32> to vector<1x128xf32>
    %54 = arith.mulf %51, %51 : vector<16x128xf32>
    %cst_30 = arith.constant dense<0.000000e+00> : vector<128xf32>
    %55 = vector.multi_reduction <add>, %54, %cst_30 [0] : vector<16x128xf32> to vector<128xf32>
    %56 = vector.shape_cast %55 : vector<128xf32> to vector<1x128xf32>
    %57 = tpu.concatenate %53, %56 in 0 : vector<1x128xf32>, vector<1x128xf32> -> vector<2x128xf32>
    %c0_31 = arith.constant 0 : index
    %c0_32 = arith.constant 0 : index
    %58 = vector.load %arg5[%c0_31, %c0_32] : memref<128x128xf32, #tpu.memory_space<vmem>>, vector<128x128xf32>
    %cst_33 = arith.constant dense<0.000000e+00> : vector<2x128xf32>
    %59 = tpu.matmul %57, %58, %cst_33 {dimension_numbers = #tpu.dot_dimension_numbers<[1], [0], [0], [1], [0, 0, 1, 1], [], []>} : vector<2x128xf32>, vector<128x128xf32>, vector<2x128xf32> -> vector<2x128xf32>
    %60 = vector.extract_strided_slice %59 {offsets = [0, 0], sizes = [1, 128], strides = [1, 1]} : vector<2x128xf32> to vector<1x128xf32>
    %61 = vector.extract_strided_slice %59 {offsets = [1, 0], sizes = [1, 128], strides = [1, 1]} : vector<2x128xf32> to vector<1x128xf32>
    %62 = arith.mulf %60, %60 : vector<1x128xf32>
    %63 = arith.subf %61, %62 : vector<1x128xf32>
    %cst_34 = arith.constant 0.000000e+00 : f32
    %64 = vector.broadcast %cst_34 : f32 to vector<1x128xf32>
    %65 = arith.maximumf %63, %64 : vector<1x128xf32>
    %cst_35 = arith.constant 9.99999974E-6 : f32
    %66 = vector.broadcast %cst_35 : f32 to vector<1x128xf32>
    %67 = arith.addf %65, %66 : vector<1x128xf32>
    %68 = math.rsqrt %67 : vector<1x128xf32>
    %69 = vector.broadcast %60 : vector<1x128xf32> to vector<16x128xf32>
    %70 = arith.subf %51, %69 : vector<16x128xf32>
    %71 = vector.broadcast %68 : vector<1x128xf32> to vector<16x128xf32>
    %72 = arith.mulf %70, %71 : vector<16x128xf32>
    %cst_36 = arith.constant 0.000000e+00 : f32
    %73 = vector.broadcast %cst_36 : f32 to vector<16x128xf32>
    %74 = arith.cmpf ogt, %72, %73 : vector<16x128xf32>
    %cst_37 = arith.constant 0.000000e+00 : f32
    %75 = vector.broadcast %cst_37 : f32 to vector<16x128xf32>
    %76 = arith.minimumf %72, %75 : vector<16x128xf32>
    %77 = math.exp %76 : vector<16x128xf32>
    %cst_38 = arith.constant 1.000000e+00 : f32
    %78 = vector.broadcast %cst_38 : f32 to vector<16x128xf32>
    %79 = arith.subf %77, %78 : vector<16x128xf32>
    %80 = arith.select %74, %72, %79 : vector<16x128xi1>, vector<16x128xf32>
    %81 = arith.truncf %80 : vector<16x128xf32> to vector<16x128xbf16>
    %c25_39 = arith.constant 25 : index
    %c0_40 = arith.constant 0 : index
    %82 = vector.load %arg7[%c25_39, %c0_40] : memref<56x128xbf16, #tpu.memory_space<vmem>>, vector<16x128xbf16>
    tpu.vector_store %arg7[%c25_39, %c0_40], %81 {strides = array<i32>} : memref<56x128xbf16, #tpu.memory_space<vmem>>, vector<16x128xbf16>,
    %c0_41 = arith.constant 0 : index
    %c0_42 = arith.constant 0 : index
    %83 = vector.load %arg7[%c0_41, %c0_42] : memref<56x128xbf16, #tpu.memory_space<vmem>>, vector<56x128xbf16>
    %84 = vector.extract_strided_slice %83 {offsets = [0, 0], sizes = [48, 128], strides = [1, 1]} : vector<56x128xbf16> to vector<48x128xbf16>
    %85 = vector.extract_strided_slice %83 {offsets = [1, 0], sizes = [48, 128], strides = [1, 1]} : vector<56x128xbf16> to vector<48x128xbf16>
    %86 = vector.extract_strided_slice %83 {offsets = [2, 0], sizes = [48, 128], strides = [1, 1]} : vector<56x128xbf16> to vector<48x128xbf16>
    %87 = tpu.concatenate %84, %85, %86 in 1 : vector<48x128xbf16>, vector<48x128xbf16>, vector<48x128xbf16> -> vector<48x384xbf16>
    %c0_43 = arith.constant 0 : index
    %c0_44 = arith.constant 0 : index
    %88 = vector.load %arg3[%c0_43, %c0_44] : memref<384x128xbf16, #tpu.memory_space<vmem>>, vector<384x128xbf16>
    %cst_45 = arith.constant dense<0.000000e+00> : vector<48x128xf32>
    %89 = tpu.matmul %87, %88, %cst_45 {dimension_numbers = #tpu.dot_dimension_numbers<[1], [0], [0], [1], [0, 0, 1, 1], [], []>} : vector<48x384xbf16>, vector<384x128xbf16>, vector<48x128xf32> -> vector<48x128xf32>
    %90 = vector.extract_strided_slice %89 {offsets = [0, 0], sizes = [16, 128], strides = [1, 1]} : vector<48x128xf32> to vector<16x128xf32>
    %cst_46 = arith.constant dense<0.000000e+00> : vector<128xf32>
    %91 = vector.multi_reduction <add>, %90, %cst_46 [0] : vector<16x128xf32> to vector<128xf32>
    %92 = vector.shape_cast %91 : vector<128xf32> to vector<1x128xf32>
    %93 = arith.mulf %90, %90 : vector<16x128xf32>
    %cst_47 = arith.constant dense<0.000000e+00> : vector<128xf32>
    %94 = vector.multi_reduction <add>, %93, %cst_47 [0] : vector<16x128xf32> to vector<128xf32>
    %95 = vector.shape_cast %94 : vector<128xf32> to vector<1x128xf32>
    %96 = tpu.concatenate %92, %95 in 0 : vector<1x128xf32>, vector<1x128xf32> -> vector<2x128xf32>
    %c0_48 = arith.constant 0 : index
    %c0_49 = arith.constant 0 : index
    %97 = vector.load %arg5[%c0_48, %c0_49] : memref<128x128xf32, #tpu.memory_space<vmem>>, vector<128x128xf32>
    %cst_50 = arith.constant dense<0.000000e+00> : vector<2x128xf32>
    %98 = tpu.matmul %96, %97, %cst_50 {dimension_numbers = #tpu.dot_dimension_numbers<[1], [0], [0], [1], [0, 0, 1, 1], [], []>} : vector<2x128xf32>, vector<128x128xf32>, vector<2x128xf32> -> vector<2x128xf32>
    %99 = vector.extract_strided_slice %98 {offsets = [0, 0], sizes = [1, 128], strides = [1, 1]} : vector<2x128xf32> to vector<1x128xf32>
    %100 = vector.extract_strided_slice %98 {offsets = [1, 0], sizes = [1, 128], strides = [1, 1]} : vector<2x128xf32> to vector<1x128xf32>
    %101 = arith.mulf %99, %99 : vector<1x128xf32>
    %102 = arith.subf %100, %101 : vector<1x128xf32>
    %cst_51 = arith.constant 0.000000e+00 : f32
    %103 = vector.broadcast %cst_51 : f32 to vector<1x128xf32>
    %104 = arith.maximumf %102, %103 : vector<1x128xf32>
    %cst_52 = arith.constant 9.99999974E-6 : f32
    %105 = vector.broadcast %cst_52 : f32 to vector<1x128xf32>
    %106 = arith.addf %104, %105 : vector<1x128xf32>
    %107 = math.rsqrt %106 : vector<1x128xf32>
    %108 = vector.broadcast %99 : vector<1x128xf32> to vector<16x128xf32>
    %109 = arith.subf %90, %108 : vector<16x128xf32>
    %110 = vector.broadcast %107 : vector<1x128xf32> to vector<16x128xf32>
    %111 = arith.mulf %109, %110 : vector<16x128xf32>
    %cst_53 = arith.constant 0.000000e+00 : f32
    %112 = vector.broadcast %cst_53 : f32 to vector<16x128xf32>
    %113 = arith.cmpf ogt, %111, %112 : vector<16x128xf32>
    %cst_54 = arith.constant 0.000000e+00 : f32
    %114 = vector.broadcast %cst_54 : f32 to vector<16x128xf32>
    %115 = arith.minimumf %111, %114 : vector<16x128xf32>
    %116 = math.exp %115 : vector<16x128xf32>
    %cst_55 = arith.constant 1.000000e+00 : f32
    %117 = vector.broadcast %cst_55 : f32 to vector<16x128xf32>
    %118 = arith.subf %116, %117 : vector<16x128xf32>
    %119 = arith.select %113, %111, %118 : vector<16x128xi1>, vector<16x128xf32>
    %c1_56 = arith.constant 1 : index
    %c0_57 = arith.constant 0 : index
    %120 = vector.load %arg8[%c1_56, %c0_57] : memref<56x128xf32, #tpu.memory_space<vmem>>, vector<16x128xf32>
    tpu.vector_store %arg8[%c1_56, %c0_57], %119 {strides = array<i32>} : memref<56x128xf32, #tpu.memory_space<vmem>>, vector<16x128xf32>,
    %121 = vector.extract_strided_slice %89 {offsets = [24, 0], sizes = [16, 128], strides = [1, 1]} : vector<48x128xf32> to vector<16x128xf32>
    %cst_58 = arith.constant dense<0.000000e+00> : vector<128xf32>
    %122 = vector.multi_reduction <add>, %121, %cst_58 [0] : vector<16x128xf32> to vector<128xf32>
    %123 = vector.shape_cast %122 : vector<128xf32> to vector<1x128xf32>
    %124 = arith.mulf %121, %121 : vector<16x128xf32>
    %cst_59 = arith.constant dense<0.000000e+00> : vector<128xf32>
    %125 = vector.multi_reduction <add>, %124, %cst_59 [0] : vector<16x128xf32> to vector<128xf32>
    %126 = vector.shape_cast %125 : vector<128xf32> to vector<1x128xf32>
    %127 = tpu.concatenate %123, %126 in 0 : vector<1x128xf32>, vector<1x128xf32> -> vector<2x128xf32>
    %c0_60 = arith.constant 0 : index
    %c0_61 = arith.constant 0 : index
    %128 = vector.load %arg5[%c0_60, %c0_61] : memref<128x128xf32, #tpu.memory_space<vmem>>, vector<128x128xf32>
    %cst_62 = arith.constant dense<0.000000e+00> : vector<2x128xf32>
    %129 = tpu.matmul %127, %128, %cst_62 {dimension_numbers = #tpu.dot_dimension_numbers<[1], [0], [0], [1], [0, 0, 1, 1], [], []>} : vector<2x128xf32>, vector<128x128xf32>, vector<2x128xf32> -> vector<2x128xf32>
    %130 = vector.extract_strided_slice %129 {offsets = [0, 0], sizes = [1, 128], strides = [1, 1]} : vector<2x128xf32> to vector<1x128xf32>
    %131 = vector.extract_strided_slice %129 {offsets = [1, 0], sizes = [1, 128], strides = [1, 1]} : vector<2x128xf32> to vector<1x128xf32>
    %132 = arith.mulf %130, %130 : vector<1x128xf32>
    %133 = arith.subf %131, %132 : vector<1x128xf32>
    %cst_63 = arith.constant 0.000000e+00 : f32
    %134 = vector.broadcast %cst_63 : f32 to vector<1x128xf32>
    %135 = arith.maximumf %133, %134 : vector<1x128xf32>
    %cst_64 = arith.constant 9.99999974E-6 : f32
    %136 = vector.broadcast %cst_64 : f32 to vector<1x128xf32>
    %137 = arith.addf %135, %136 : vector<1x128xf32>
    %138 = math.rsqrt %137 : vector<1x128xf32>
    %139 = vector.broadcast %130 : vector<1x128xf32> to vector<16x128xf32>
    %140 = arith.subf %121, %139 : vector<16x128xf32>
    %141 = vector.broadcast %138 : vector<1x128xf32> to vector<16x128xf32>
    %142 = arith.mulf %140, %141 : vector<16x128xf32>
    %cst_65 = arith.constant 0.000000e+00 : f32
    %143 = vector.broadcast %cst_65 : f32 to vector<16x128xf32>
    %144 = arith.cmpf ogt, %142, %143 : vector<16x128xf32>
    %cst_66 = arith.constant 0.000000e+00 : f32
    %145 = vector.broadcast %cst_66 : f32 to vector<16x128xf32>
    %146 = arith.minimumf %142, %145 : vector<16x128xf32>
    %147 = math.exp %146 : vector<16x128xf32>
    %cst_67 = arith.constant 1.000000e+00 : f32
    %148 = vector.broadcast %cst_67 : f32 to vector<16x128xf32>
    %149 = arith.subf %147, %148 : vector<16x128xf32>
    %150 = arith.select %144, %142, %149 : vector<16x128xi1>, vector<16x128xf32>
    %c25_68 = arith.constant 25 : index
    %c0_69 = arith.constant 0 : index
    %151 = vector.load %arg8[%c25_68, %c0_69] : memref<56x128xf32, #tpu.memory_space<vmem>>, vector<16x128xf32>
    tpu.vector_store %arg8[%c25_68, %c0_69], %150 {strides = array<i32>} : memref<56x128xf32, #tpu.memory_space<vmem>>, vector<16x128xf32>,
    %c0_70 = arith.constant 0 : index
    %c0_71 = arith.constant 0 : index
    %152 = vector.load %arg8[%c0_70, %c0_71] : memref<56x128xf32, #tpu.memory_space<vmem>>, vector<56x128xf32>
    %153 = vector.extract_strided_slice %152 {offsets = [0, 0], sizes = [48, 128], strides = [1, 1]} : vector<56x128xf32> to vector<48x128xf32>
    %154 = vector.extract_strided_slice %152 {offsets = [1, 0], sizes = [48, 128], strides = [1, 1]} : vector<56x128xf32> to vector<48x128xf32>
    %155 = vector.extract_strided_slice %152 {offsets = [2, 0], sizes = [48, 128], strides = [1, 1]} : vector<56x128xf32> to vector<48x128xf32>
    %156 = tpu.concatenate %153, %154, %155 in 1 : vector<48x128xf32>, vector<48x128xf32>, vector<48x128xf32> -> vector<48x384xf32>
    %c0_72 = arith.constant 0 : index
    %c0_73 = arith.constant 0 : index
    %157 = vector.load %arg4[%c0_72, %c0_73] : memref<384x128xf32, #tpu.memory_space<vmem>>, vector<384x128xf32>
    %cst_74 = arith.constant dense<0.000000e+00> : vector<48x128xf32>
    %158 = tpu.matmul %156, %157, %cst_74 {dimension_numbers = #tpu.dot_dimension_numbers<[1], [0], [0], [1], [0, 0, 1, 1], [], []>} : vector<48x384xf32>, vector<384x128xf32>, vector<48x128xf32> -> vector<48x128xf32>
    %c0_75 = arith.constant 0 : index
    %c0_76 = arith.constant 0 : index
    %c0_77 = arith.constant 0 : index
    %159 = vector.load %arg1[%c0_75, %c0_76, %c0_77] : memref<2x16x128xf32, #tpu.memory_space<vmem>>, vector<1x16x128xf32>
    %160 = vector.shape_cast %159 : vector<1x16x128xf32> to vector<16x128xf32>
    %161 = vector.extract_strided_slice %158 {offsets = [0, 0], sizes = [16, 128], strides = [1, 1]} : vector<48x128xf32> to vector<16x128xf32>
    %162 = arith.addf %160, %161 : vector<16x128xf32>
    %c0_78 = arith.constant 0 : index
    %c0_79 = arith.constant 0 : index
    %c0_80 = arith.constant 0 : index
    %163 = vector.load %arg6[%c0_78, %c0_79, %c0_80] : memref<2x16x128xf32, #tpu.memory_space<vmem>>, vector<1x16x128xf32>
    %164 = vector.shape_cast %163 : vector<1x16x128xf32> to vector<16x128xf32>
    %165 = vector.shape_cast %162 : vector<16x128xf32> to vector<1x16x128xf32>
    tpu.vector_store %arg6[%c0_78, %c0_79, %c0_80], %165 {strides = array<i32>} : memref<2x16x128xf32, #tpu.memory_space<vmem>>, vector<1x16x128xf32>,
    %c1_81 = arith.constant 1 : index
    %c0_82 = arith.constant 0 : index
    %c0_83 = arith.constant 0 : index
    %166 = vector.load %arg1[%c1_81, %c0_82, %c0_83] : memref<2x16x128xf32, #tpu.memory_space<vmem>>, vector<1x16x128xf32>
    %167 = vector.shape_cast %166 : vector<1x16x128xf32> to vector<16x128xf32>
    %168 = vector.extract_strided_slice %158 {offsets = [24, 0], sizes = [16, 128], strides = [1, 1]} : vector<48x128xf32> to vector<16x128xf32>
    %169 = arith.addf %167, %168 : vector<16x128xf32>
    %c1_84 = arith.constant 1 : index
    %c0_85 = arith.constant 0 : index
    %c0_86 = arith.constant 0 : index
    %170 = vector.load %arg6[%c1_84, %c0_85, %c0_86] : memref<2x16x128xf32, #tpu.memory_space<vmem>>, vector<1x16x128xf32>
    %171 = vector.shape_cast %170 : vector<1x16x128xf32> to vector<16x128xf32>
    %172 = vector.shape_cast %169 : vector<16x128xf32> to vector<1x16x128xf32>
    tpu.vector_store %arg6[%c1_84, %c0_85, %c0_86], %172 {strides = array<i32>} : memref<2x16x128xf32, #tpu.memory_space<vmem>>, vector<1x16x128xf32>,
    return
  }
  func.func @transform_0(%arg0: i32) -> (i32, i32, i32) {
    %c0_i32 = arith.constant 0 : i32
    %c0_i32_0 = arith.constant 0 : i32
    %c0_i32_1 = arith.constant 0 : i32
    %c0_i32_2 = arith.constant 0 : i32
    return %c0_i32, %c0_i32_0, %c0_i32_1 : i32, i32, i32
  }
  func.func @transform_1(%arg0: i32) -> (i32, i32) {
    %c0_i32 = arith.constant 0 : i32
    %c0_i32_0 = arith.constant 0 : i32
    %c0_i32_1 = arith.constant 0 : i32
    return %c0_i32, %c0_i32_0 : i32, i32
  }
  func.func @transform_2(%arg0: i32) -> (i32, i32) {
    %c0_i32 = arith.constant 0 : i32
    %c0_i32_0 = arith.constant 0 : i32
    %c0_i32_1 = arith.constant 0 : i32
    return %c0_i32, %c0_i32_0 : i32, i32
  }
  func.func @transform_3(%arg0: i32) -> (i32, i32) {
    %c0_i32 = arith.constant 0 : i32
    %c0_i32_0 = arith.constant 0 : i32
    %c0_i32_1 = arith.constant 0 : i32
    return %c0_i32, %c0_i32_0 : i32, i32
  }
  func.func @transform_4(%arg0: i32) -> (i32, i32) {
    %c0_i32 = arith.constant 0 : i32
    %c0_i32_0 = arith.constant 0 : i32
    %c0_i32_1 = arith.constant 0 : i32
    return %c0_i32, %c0_i32_0 : i32, i32
  }
  func.func @transform_5(%arg0: i32) -> (i32, i32, i32) {
    %c0_i32 = arith.constant 0 : i32
    %c0_i32_0 = arith.constant 0 : i32
    %c0_i32_1 = arith.constant 0 : i32
    %c0_i32_2 = arith.constant 0 : i32
    return %c0_i32, %c0_i32_0, %c0_i32_1 : i32, i32, i32
  }
}

</mosaic_0001>

<bundles_post_ra>
// kernel: residual_conv.1
= control target key start
LH: loop header
LB: loop body
LE: loop exit
PB: predicated region body
PF: predicated region fallthrough
CT: control target
= control target key end

     0   :  { %10 = vsyncpa [#allocation5], 0  ;;  %s2614_s18 = smov [#allocation4]   ;;  %s3243_s0 = inlined_call_operand.vmem [shape: f32[2,16,128], index: 0, kind: input, shape index: {}]   ;;  %s3244_s1 = inlined_call_operand.vmem [shape: bf16[384,128], index: 1, kind: input, shape index: {}]   ;;  %s3245_s2 = inlined_call_operand.vmem [shape: bf16[384,128], index: 2, kind: input, shape index: {}]   ;;  %s3246_s3 = inlined_call_operand.vmem [shape: f32[384,128], index: 3, kind: input, shape index: {}]   ;;  %s3247_s4 = inlined_call_operand.hbm [shape: f32[128,128], index: 4, kind: input, shape index: {}]   ;;  %s3248_s5 = inlined_call_operand.vmem [shape: f32[2,16,128], index: 5, kind: output, shape index: {}]  }
   0x1   :  { %s24_s19 = sshll.u32 %s2614_s18, 4  ;;  %s2590_s22 = scalar_lea.hbm %s3247_s4, 2048  ;;  %s25_s19 = int_to_ptr.vmem [resolvable:$true] %s24_s19 }
   0x2   :  { %p2591_p0 = scmp.ne.s32.totalorder %s3247_s4, %s2590_s22  ;;  %p2594_p1 = scmp.lt.u32.totalorder %s2590_s22, %s3247_s4 }
   0x4   :  { %p2596_p2 = pnand %p2594_p1, %p2591_p0 }
   0x6   :  { %2599 = shalt.err (!%p2596_p2)
}
   0x7   :  { %s2600_s27 = scalar_lea.vmem %s25_s19, 2048  ;;  %p2605_p4 = scmp.lt.s32.totalorder %s25_s19, %s25_s19 }
   0x8   :  { %p2601_p3 = scmp.ne.s32.totalorder %s25_s19, %s2600_s27  ;;  %p2606_p5 = scmp.lt.s32.totalorder %s2600_s27, %s2600_s27 }
   0xa   :  { %p2607_p6 = por %p2606_p5, %p2605_p4 }
   0xc   :  { %p2608_p7 = pnand %p2607_p6, %p2601_p3 }
   0xe   :  { %2611 = shalt.err (!%p2608_p7)
}
   0xf   :  { %s2615_s28 = smov 128   ;;  %s2616_s29 = smov 8  }
  0x10   :  { %30 = dma.hbm_to_vmem [thread:$0]  %s3247_s4, 2048, %s25_s19, [#allocation5], %s2615_s28, %s2615_s28, %s2616_s29  }
  0x11   :  { %2612 = dma.done.wait [#allocation5], 2048  }
  0x12   :  { %2613 = vsyncadd [#allocation5], 4294965248  ;;  %v2617_v0 = vmov 0.0   ;;  %v2618_v1 = vmov 0   ;;  %vm2619_vm0 = vmmov 0   ;;  %v2509_v2 = vld [vmem:[%s3244_s1 + $0x40] sm:$0xff]  }
  0x13   :  { %2105 = vmatprep.subr.bf16.mxu1 %v2617_v0  ;;  %42 = vst [vmem:[#allocation3] sm:$0xff] %v2617_v0  ;;  %43 = vst [vmem:[#allocation3 + $0x8] sm:$0xff] %v2617_v0  ;;  %2121 = vmatprep.mubr.msk.bf16.mxu1 %vm2619_vm0, %v2617_v0  ;;  %v2510_v3 = vld [vmem:[%s3244_s1] sm:$0xff]   ;;  %v2512_v5 = vld [vmem:[%s3244_s1 + $0x48] sm:$0xff]   ;;  %vm57_vm1 = vsmask.f32 256 }
  0x14   :  { %44 = vst [vmem:[#allocation3 + $0x10] sm:$0xff] %v2617_v0  ;;  %45 = vst [vmem:[#allocation3 + $0x18] sm:$0xff] %v2617_v0  ;;  %1875 = vmatprep.subr.bf16.mxu0 %v2509_v2  ;;  %v2511_v4 = vld [vmem:[%s3244_s1 + $0x80] sm:$0xff]   ;;  %v2513_v6 = vld [vmem:[%s3244_s1 + $0x8] sm:$0xff]   ;;  %vm58_vm2 = vsmask.f32 4368 }
  0x15   :  { %46 = vst [vmem:[#allocation3 + $0x20] sm:$0xff] %v2617_v0  ;;  %47 = vst [vmem:[#allocation3 + $0x28] sm:$0xff] %v2617_v0  ;;  %1876 = vmatpush3.bf16.msra.mxu0 %v2510_v3  ;;  %2106 = vmatpush3.bf16.msra.mxu1 %v2511_v4  ;;  %v2514_v7 = vld [vmem:[%s3244_s1 + $0x88] sm:$0xff]   ;;  %v2515_v8 = vld [vmem:[%s3244_s1 + $0x50] sm:$0xff]   ;;  %vm80_vm3 = vcmask 1043456   ;;  %vm87_vm5 = vcmask 1040384  }
  0x16   :  { %35 = vst [vmem:[#allocation2] sm:$0xf] %v2618_v1  ;;  %36 = vst [vmem:[#allocation2 + $0x4] sm:$0xf] %v2618_v1  ;;  %1877 = vmatprep.subr.bf16.mxu0 %v2512_v5  ;;  %2107 = vmatprep.subr.bf16.mxu1 %v2617_v0  ;;  %v2516_v9 = vld [vmem:[%s3244_s1 + $0x10] sm:$0xff]   ;;  %v2518_v11 = vld [vmem:[%s3244_s1 + $0x58] sm:$0xff]  }
  0x17   :  { %37 = vst [vmem:[#allocation2 + $0x8] sm:$0xf] %v2618_v1  ;;  %38 = vst [vmem:[#allocation2 + $0xc] sm:$0xf] %v2618_v1  ;;  %v2517_v10 = vld [vmem:[%s3244_s1 + $0x90] sm:$0xff]   ;;  %v2519_v12 = vld [vmem:[%s3244_s1 + $0x18] sm:$0xff]  }
  0x18   :  { %39 = vst [vmem:[#allocation2 + $0x10] sm:$0xf] %v2618_v1  ;;  %40 = vst [vmem:[#allocation2 + $0x14] sm:$0xf] %v2618_v1  ;;  %v2520_v13 = vld [vmem:[%s3244_s1 + $0x98] sm:$0xff]   ;;  %v2521_v14 = vld [vmem:[%s3244_s1 + $0x60] sm:$0xff]  }
  0x19   :  { %41 = vst [vmem:[#allocation2 + $0x18] sm:$0xf] %v2618_v1  ;;  %1878 = vmatpush3.bf16.msra.mxu0 %v2513_v6  ;;  %2108 = vmatpush3.bf16.msra.mxu1 %v2514_v7  ;;  %v2522_v15 = vld [vmem:[%s3244_s1 + $0x20] sm:$0xff]   ;;  %v2524_v17 = vld [vmem:[%s3244_s1 + $0x68] sm:$0xff]   ;;  %v2527_v20 = vld [vmem:[%s3244_s1 + $0x70] sm:$0xff]   ;;  %v2620_v59 = vmov 0.0|0.0  }
  0x1a   :  { %1879 = vmatprep.subr.bf16.mxu0 %v2515_v8  ;;  %2109 = vmatprep.subr.bf16.mxu1 %v2617_v0  ;;  %v2523_v16 = vld [vmem:[%s3244_s1 + $0xa0] sm:$0xff]   ;;  %v2525_v18 = vld [vmem:[%s3244_s1 + $0x28] sm:$0xff]   ;;  %v2528_v21 = vld [vmem:[%s3244_s1 + $0x30] sm:$0xff]   ;;  %vm81_vm4 = vsmask.f32 7938  ;;  %vm188_vm10 = vcmask 1046528  }
  0x1b   :  { %v2526_v19 = vld [vmem:[%s3244_s1 + $0xa8] sm:$0xff]   ;;  %v2529_v22 = vld [vmem:[%s3244_s1 + $0xb0] sm:$0xff]   ;;  %v2530_v23 = vld [vmem:[%s3244_s1 + $0x78] sm:$0xff]   ;;  %vm156_vm9 = vsmask.f32 7424 }
  0x1c   :  { %v49_v24 = vld [vmem:[%s3243_s0] sm:$0xff]  ;;  %v50_v25 = vld [vmem:[%s3243_s0 + $0x8] sm:$0xff]  ;;  %v1791_v28 = vld [vmem:[%s3243_s0 + $0x10] sm:$0xff] }
  0x1d   :  { %1880 = vmatpush3.bf16.msra.mxu0 %v2516_v9  ;;  %2110 = vmatpush3.bf16.msra.mxu1 %v2517_v10  ;;  %v1867_v26 = vpack.c.bf16 %v49_v24, %v49_v24  ;;  %v1868_v27 = vpack.c.bf16 %v50_v25, %v50_v25  ;;  %v1869_v29 = vpack.c.bf16 %v1791_v28, %v1791_v28  ;;  %v1792_v30 = vld [vmem:[%s3243_s0 + $0x18] sm:$0xff]  ;;  %vm2764_vm6 = vmor %vm57_vm1, %vm58_vm2  ;;  %v83_v38 = vld [vmem:[#allocation2] sm:$0xf] }
  0x1e   :  { %1881 = vmatprep.subr.bf16.mxu0 %v2518_v11  ;;  %2111 = vmatprep.subr.bf16.mxu1 %v2617_v0  ;;  %v2531_v31 = vld [vmem:[%s3244_s1 + $0x38] sm:$0xff]   ;;  %v1870_v41 = vpack.c.bf16 %v1792_v30, %v1792_v30  ;;  %vm2771_vm7 = vmand %vm80_vm3, %vm81_vm4  ;;  %v89_v45 = vld [vmem:[#allocation2 + $0x8] sm:$0x1] }
  0x1f   :  { %v61_v32 = vshrl.u32 %v1867_v26, 16  ;;  %v64_v33 = vshll.u32 %v1867_v26, 16  ;;  %v69_v34 = vshrl.u32 %v1868_v27, 16  ;;  %v72_v35 = vshll.u32 %v1868_v27, 16  ;;  %v2532_v36 = vld [vmem:[%s3244_s1 + $0xb8] sm:$0xff]   ;;  %vm2777_vm8 = vmand %vm87_vm5, %vm57_vm1  ;;  %v521_v24 = vld [vmem:[#allocation4 + $0x10] sm:$0xff] }
  0x20   :  { %v102_v39 = vshrl.u32 %v1869_v29, 16  ;;  %v105_v40 = vshll.u32 %v1869_v29, 16  ;;  %v121_v46 = vld [vmem:[#allocation2 + $0xc] sm:$0xf]  ;;  %v110_v49 = vshrl.u32 %v1870_v41, 16  ;;  %v113_v50 = vshll.u32 %v1870_v41, 16 }
  0x21   :  { %1882 = vmatpush3.bf16.msra.mxu0 %v2519_v12  ;;  %2112 = vmatpush3.bf16.msra.mxu1 %v2520_v13  ;;  %v63_v42 = vrot.slane %v61_v32, 7  ;;  %v71_v43 = vrot.slane %v69_v34, 7  ;;  %v125_v58 = vld [vmem:[#allocation2 + $0x14] sm:$0x1]  ;;  %v2536_v5 = vld [vmem:[#allocation2 + $0x18] ss:$0 sps:$4 sm:$0xff]  }
  0x22   :  { %1883 = vmatprep.subr.bf16.mxu0 %v2521_v14  ;;  %2113 = vmatprep.subr.bf16.mxu1 %v2617_v0  ;;  %v104_v48 = vrot.slane %v102_v39, 7  ;;  %v112_v57 = vrot.slane %v110_v49, 7  ;;  %v519_v8 = vld [vmem:[#allocation4] sm:$0xff]  ;;  %v520_v9 = vld [vmem:[#allocation4 + $0x8] sm:$0xff]  ;;  %v522_v25 = vld [vmem:[#allocation4 + $0x18] sm:$0xff]  ;;  %vm1517_vm1 = vcmask 1045504  }
  0x23   :  { %v66_v51 = vor.u32 %v64_v33, %v63_v42  ;;  %v67_v52 = vrot.slane %v63_v42, 4  ;;  %v74_v53 = vor.u32 %v72_v35, %v71_v43  ;;  %v76_v54 = vrot.slane %v71_v43, 4  ;;  %v524_v41 = vld [vmem:[#allocation4 + $0x28] sm:$0xff]  ;;  %v525_v43 = vld [vmem:[#allocation4 + $0x30] sm:$0xff] }
  0x24   :  { %v107_v55 = vor.u32 %v105_v40, %v104_v48  ;;  %v108_v56 = vrot.slane %v104_v48, 4  ;;  %v115_v1 = vor.u32 %v113_v50, %v112_v57  ;;  %v117_v2 = vrot.slane %v112_v57, 4  ;;  %v523_v40 = vld [vmem:[#allocation4 + $0x20] sm:$0xff]  ;;  %v528_v49 = vld [vmem:[#allocation4 + $0x48] sm:$0xff]  ;;  %v533_v57 = vld [vmem:[#allocation4 + $0x70] sm:$0xff] }
  0x25   :  { %1884 = vmatpush3.bf16.msra.mxu0 %v2522_v15  ;;  %2114 = vmatpush3.bf16.msra.mxu1 %v2523_v16  ;;  %v75_v60 = vsel %vm2764_vm6, %v67_v52, %v74_v53  ;;  %v84_v61 = vsel %vm2771_vm7, %v66_v51, %v83_v38  ;;  %v90_v62 = vsel %vm2777_vm8, %v76_v54, %v89_v45  ;;  %v526_v45 = vld [vmem:[#allocation4 + $0x38] sm:$0xff]  ;;  %v527_v48 = vld [vmem:[#allocation4 + $0x40] sm:$0xff]  ;;  %v529_v51 = vld [vmem:[#allocation4 + $0x50] sm:$0xff] }
  0x26   :  { %1885 = vmatprep.subr.bf16.mxu0 %v2524_v17  ;;  %2115 = vmatprep.subr.bf16.mxu1 %v2617_v0  ;;  %85 = vst [vmem:[#allocation2] sm:$0xf] %v84_v61  ;;  %86 = vst [vmem:[#allocation2 + $0x4] sm:$0xf] %v75_v60  ;;  %v122_v63 = vsel %vm2771_vm7, %v107_v55, %v121_v46  ;;  %v116_v3 = vsel %vm2764_vm6, %v108_v56, %v115_v1  ;;  %v181_v17 = vshll.u32 %v2536_v5, 16  ;;  %v530_v52 = vld [vmem:[#allocation4 + $0x58] sm:$0xff] }
  0x27   :  { %91 = vst [vmem:[#allocation2 + $0x8] sm:$0x1] %v90_v62  ;;  %123 = vst [vmem:[#allocation2 + $0xc] sm:$0xf] %v122_v63  ;;  %v126_v4 = vsel %vm2777_vm8, %v117_v2, %v125_v58  ;;  %v2804_v32 = vpack.c.bf16 %v522_v25, %v521_v24  ;;  %v2821_v42 = vpack.c.bf16 %v524_v41, %v523_v40  ;;  %v531_v54 = vld [vmem:[#allocation4 + $0x60] sm:$0xff]  ;;  %v532_v55 = vld [vmem:[#allocation4 + $0x68] sm:$0xff] }
  0x28   :  { %124 = vst [vmem:[#allocation2 + $0x10] sm:$0xf] %v116_v3  ;;  %127 = vst [vmem:[#allocation2 + $0x14] sm:$0x1] %v126_v4  ;;  %v183_v35 = vrot.slane %v181_v17, 1  ;;  %v2827_v46 = vpack.c.bf16 %v526_v45, %v525_v43  ;;  %v2833_v50 = vpack.c.bf16 %v528_v49, %v527_v48  ;;  %v2839_v53 = vpack.c.bf16 %v530_v52, %v529_v51  ;;  %v534_v58 = vld [vmem:[#allocation4 + $0x78] sm:$0xff] }
  0x29   :  { %1886 = vmatpush3.bf16.msra.mxu0 %v2525_v18  ;;  %2116 = vmatpush3.bf16.msra.mxu1 %v2526_v19  ;;  %v2845_v56 = vpack.c.bf16 %v532_v55, %v531_v54  ;;  %v2851_v60 = vpack.c.bf16 %v534_v58, %v533_v57 }
  0x2a   :  { %1887 = vmatprep.subr.bf16.mxu0 %v2527_v20  ;;  %2117 = vmatprep.subr.bf16.mxu1 %v2617_v0 }
  0x2d   :  { %1888 = vmatpush3.bf16.msra.mxu0 %v2528_v21  ;;  %2118 = vmatpush3.bf16.msra.mxu1 %v2529_v22  ;;  %v2533_v6 = vld [vmem:[#allocation2] sm:$0xff]  }
  0x2e   :  { %1889 = vmatprep.subr.bf16.mxu0 %v2530_v23  ;;  %2119 = vmatprep.subr.bf16.mxu1 %v2617_v0  ;;  %v2534_v7 = vld [vmem:[#allocation2 + $0x8] sm:$0xff]   ;;  %v158_v10 = vshrl.u32 %v2533_v6, 16  ;;  %v160_v11 = vshll.u32 %v2533_v6, 16  ;;  %v189_v13 = vrot.slane %v2533_v6, 1  ;;  %v2796_v23 = vpack.c.bf16 %v520_v9, %v519_v8 }
  0x2f   :  { %v165_v12 = vshll.u32 %v2534_v7, 16  ;;  %v190_v14 = vrot.slane %v2534_v7, 1  ;;  %v2535_v15 = vld [vmem:[#allocation2 + $0x10] sm:$0xff]   ;;  %v169_v16 = vshrl.u32 %v2534_v7, 16 }
  0x30   :  { %v162_v18 = vrot.slane %v160_v11, 1  ;;  %v173_v21 = vshll.u32 %v2535_v15, 16  ;;  %v192_v22 = vrot.slane %v2535_v15, 1  ;;  %v177_v29 = vshrl.u32 %v2535_v15, 16 }
  0x31   :  { %1890 = vmatpush3.bf16.msra.mxu0 %v2531_v31  ;;  %2120 = vmatpush3.bf16.msra.mxu1 %v2532_v36  ;;  %v167_v19 = vrot.slane %v165_v12, 1  ;;  %v191_v20 = vsel %vm188_vm10, %v189_v13, %v190_v14  ;;  %v194_v36 = vrot.slane %v2536_v5, 1 }
  0x32   :  { %2342 = vmatprep.subr.bf16.mxu0 %v2620_v59  ;;  %2366 = vmatprep.subr.bf16.mxu1 %v2620_v59  ;;  %v163_v26 = vor.u32 %v162_v18, %v158_v10  ;;  %v175_v28 = vrot.slane %v173_v21, 1  ;;  %v193_v33 = vsel %vm188_vm10, %v190_v14, %v192_v22 }
  0x33   :  { %v171_v27 = vor.u32 %v169_v16, %v167_v19  ;;  %v195_v39 = vsel %vm188_vm10, %v192_v22, %v194_v36 }
  0x34   :  { %2122 = vmatmul.mubr.bf16.vlgmr.msra.gmra.mrb[0].mxu1 %v191_v20  ;;  %v168_v30 = vsel %vm156_vm9, %v163_v26, %v167_v19  ;;  %v179_v34 = vor.u32 %v177_v29, %v175_v28 }
  0x35   :  { %2125 = vmatprep.mubr.msk.bf16.mxu1 %vm2619_vm0, %v2617_v0  ;;  %2368 = vmatpush3.bf16.msra.mxu1 %v2796_v23  ;;  %v176_v31 = vsel %vm156_vm9, %v171_v27, %v175_v28 }
  0x36   :  { %2369 = vmatprep.subr.bf16.mxu1 %v2620_v59  ;;  %423 = vmatprep.mubr.bf16.mxu0 %v168_v30  ;;  %v184_v38 = vsel %vm156_vm9, %v179_v34, %v183_v35 }
  0x37   :  { %424 = vmatmul.mubr.bf16.vlgmr.msra.gmra.mrb[0].mxu0 %v2533_v6 }
  0x38   :  { %431 = vmatprep.mubr.bf16.mxu0 %v176_v31  ;;  %2344 = vmatpush3.bf16.msra.mxu0 %v2796_v23 }
  0x39   :  { %2345 = vmatprep.subr.bf16.mxu0 %v2620_v59  ;;  %2371 = vmatpush3.bf16.msra.mxu1 %v2804_v32 }
  0x3a   :  { %2372 = vmatprep.subr.bf16.mxu1 %v2620_v59 }
  0x3c   :  { %2126 = vmatmul.mubr.bf16.gmra.mrb[4].mxu1 %v193_v33  ;;  %2347 = vmatpush3.bf16.msra.mxu0 %v2804_v32 }
  0x3d   :  { %2129 = vmatprep.mubr.msk.bf16.mxu1 %vm2619_vm0, %v2617_v0  ;;  %2348 = vmatprep.subr.bf16.mxu0 %v2620_v59 }
  0x3e   :  { %2374 = vmatpush3.bf16.msra.mxu1 %v2821_v42 }
  0x3f   :  { %432 = vmatmul.mubr.bf16.gmra.mrb[4].mxu0 %v2534_v7  ;;  %2375 = vmatprep.subr.bf16.mxu1 %v2620_v59 }
  0x40   :  { %438 = vmatprep.mubr.bf16.mxu0 %v184_v38  ;;  %2350 = vmatpush3.bf16.msra.mxu0 %v2821_v42 }
  0x41   :  { %2351 = vmatprep.subr.bf16.mxu0 %v2620_v59 }
  0x42   :  { %2377 = vmatpush3.bf16.msra.mxu1 %v2827_v46 }
  0x43   :  { %2378 = vmatprep.subr.bf16.mxu1 %v2620_v59 }
  0x44   :  { %2130 = vmatmul.mubr.bf16.gmra.mrb[8].mxu1 %v195_v39  ;;  %2353 = vmatpush3.bf16.msra.mxu0 %v2827_v46 }
  0x45   :  { %2200 = vmatprep.mubr.msk.f32.mxu1 %vm2619_vm0, %v2617_v0  ;;  %2354 = vmatprep.subr.bf16.mxu0 %v2620_v59 }
  0x46   :  { %2380 = vmatpush3.bf16.msra.mxu1 %v2833_v50 }
  0x47   :  { %439 = vmatmul.mubr.bf16.gmra.mrb[8].mxu0 %v2535_v15  ;;  %2381 = vmatprep.subr.bf16.mxu1 %v2620_v59 }
  0x48   :  { %2165 = vmatprep.mubr.msk.f32.mxu0 %vm2619_vm0, %v2617_v0  ;;  %2356 = vmatpush3.bf16.msra.mxu0 %v2833_v50 }
  0x49   :  { %2357 = vmatprep.subr.bf16.mxu0 %v2620_v59 }
  0x4a   :  { %2383 = vmatpush3.bf16.msra.mxu1 %v2839_v53 }
  0x4b   :  { %2384 = vmatprep.subr.bf16.mxu1 %v2620_v59 }
  0x4c   :  { %2359 = vmatpush3.bf16.msra.mxu0 %v2839_v53 }
  0x4d   :  { %2360 = vmatprep.subr.bf16.mxu0 %v2620_v59 }
  0x4e   :  { %2386 = vmatpush3.bf16.msra.mxu1 %v2845_v56 }
  0x4f   :  { %2387 = vmatprep.subr.bf16.mxu1 %v2620_v59 }
  0x50   :  { %2362 = vmatpush3.bf16.msra.mxu0 %v2845_v56 }
  0x51   :  { %2363 = vmatprep.subr.bf16.mxu0 %v2620_v59 }
  0x52   :  { %2389 = vmatpush3.bf16.msra.mxu1 %v2851_v60 }
  0x53   :  { %2203 = vmatprep.subr.bf16.mxu1 %v2617_v0 }
  0x54   :  { %2365 = vmatpush3.bf16.msra.mxu0 %v2851_v60 }
 0x107   :  { %v480_v61 = vpop.f32.mrb[0].mxu1 }
 0x108   :  { %v2123_v62 = vpop.f32.mrb[1].mxu1 }
 0x109   :  { %v483_v63 = vpop.f32.mrb[2].mxu1 }
 0x10a   :  { %v2124_v1 = vpop.f32.mrb[3].mxu1  ;;  %v1891_v2 = vpop.f32.mrb[0].mxu0 }
 0x10b   :  { %v1892_v3 = vpop.f32.mrb[1].mxu0 }
 0x10c   :  { %v1893_v4 = vadd.f32 %v1892_v3, %v1891_v2  ;;  %v1894_v5 = vpop.f32.mrb[2].mxu0 }
 0x10d   :  { %v1895_v6 = vpop.f32.mrb[3].mxu0 }
 0x10e   :  { %v2856_v7 = vadd.f32 %v1893_v4, %v480_v61  ;;  %v1896_v8 = vadd.f32 %v1895_v6, %v1894_v5 }
 0x10f   :  { %v488_v9 = vpop.f32.mrb[4].mxu1 }
 0x110   :  { %v2127_v10 = vpop.f32.mrb[5].mxu1  ;;  %v2858_v11 = vadd.f32 %v1896_v8, %v483_v63  ;;  %v508_v14 = vmul.f32 %v2856_v7, %v2856_v7 }
 0x111   :  { %v490_v12 = vpop.f32.mrb[6].mxu1 }
 0x112   :  { %v2128_v13 = vpop.f32.mrb[7].mxu1  ;;  %v501_v15 = vadd.f32 %v2858_v11, %v2856_v7  ;;  %v509_v16 = vmul.f32 %v2858_v11, %v2858_v11  ;;  %v1897_v17 = vpop.f32.mrb[4].mxu0 }
 0x113   :  { %v1898_v18 = vpop.f32.mrb[5].mxu0  ;;  %v2539_v17 = vld [vmem:[%s3245_s2] sm:$0xff]  }
 0x114   :  { %v502_v19 = vrot.slane %v501_v15, 4  ;;  %v510_v20 = vadd.f32 %v509_v16, %v508_v14  ;;  %v1900_v21 = vpop.f32.mrb[6].mxu0  ;;  %v2538_v16 = vld [vmem:[%s3245_s2 + $0x40] sm:$0xff]   ;;  %v2540_v18 = vld [vmem:[%s3245_s2 + $0x88] sm:$0xff]  }
 0x115   :  { %v1901_v22 = vpop.f32.mrb[7].mxu0  ;;  %1954 = vmatprep.subr.bf16.mxu0 %v2538_v16 }
 0x116   :  { %v503_v24 = vadd.f32 %v502_v19, %v501_v15  ;;  %v511_v25 = vrot.slane %v510_v20, 4  ;;  %v1902_v26 = vadd.f32 %v1901_v22, %v1900_v21  ;;  %v2537_v15 = vld [vmem:[%s3245_s2 + $0x80] sm:$0xff]   ;;  %v2541_v19 = vld [vmem:[%s3245_s2 + $0x48] sm:$0xff]   ;;  %v2543_v21 = vld [vmem:[%s3245_s2 + $0x90] sm:$0xff]  }
 0x117   :  { %v495_v27 = vpop.f32.mrb[8].mxu1  ;;  %v2544_v22 = vld [vmem:[%s3245_s2 + $0x50] sm:$0xff]  }
 0x118   :  { %v2131_v28 = vpop.f32.mrb[9].mxu1  ;;  %v504_v29 = vrot.slane %v503_v24, 2  ;;  %v512_v30 = vadd.f32 %v511_v25, %v510_v20  ;;  %v2866_v31 = vadd.f32 %v1902_v26, %v490_v12  ;;  %v2542_v20 = vld [vmem:[%s3245_s2 + $0x8] sm:$0xff]   ;;  %v2546_v25 = vld [vmem:[%s3245_s2 + $0x98] sm:$0xff]  }
 0x119   :  { %v498_v33 = vpop.f32.mrb[10].mxu1  ;;  %v2547_v26 = vld [vmem:[%s3245_s2 + $0x58] sm:$0xff]   ;;  %v2549_v28 = vld [vmem:[%s3245_s2 + $0xa0] sm:$0xff]  }
 0x11a   :  { %v2132_v34 = vpop.f32.mrb[11].mxu1  ;;  %v505_v35 = vadd.f32 %v504_v29, %v503_v24  ;;  %v513_v36 = vrot.slane %v512_v30, 2  ;;  %v1903_v38 = vpop.f32.mrb[8].mxu0  ;;  %v677_v52 = vmul.f32 %v2866_v31, %v2866_v31  ;;  %v2545_v24 = vld [vmem:[%s3245_s2 + $0x10] sm:$0xff]   ;;  %v2550_v29 = vld [vmem:[%s3245_s2 + $0x60] sm:$0xff]   ;;  %v2552_v33 = vld [vmem:[%s3245_s2 + $0xa8] sm:$0xff]  }
 0x11b   :  { %v1904_v39 = vpop.f32.mrb[9].mxu0  ;;  %v2553_v34 = vld [vmem:[%s3245_s2 + $0x68] sm:$0xff]  }
 0x11c   :  { %v1905_v40 = vadd.f32 %v1904_v39, %v1903_v38  ;;  %v1906_v41 = vpop.f32.mrb[10].mxu0  ;;  %v506_v43 = vrot.slane %v505_v35, 1  ;;  %v514_v45 = vadd.f32 %v513_v36, %v512_v30  ;;  %v2551_v30 = vld [vmem:[%s3245_s2 + $0x20] sm:$0xff]   ;;  %v2555_v36 = vld [vmem:[%s3245_s2 + $0xb0] sm:$0xff]  }
 0x11d   :  { %v1907_v48 = vpop.f32.mrb[11].mxu0  ;;  %v2556_v38 = vld [vmem:[%s3245_s2 + $0x70] sm:$0xff]   ;;  %v2559_v41 = vld [vmem:[%s3245_s2 + $0x78] sm:$0xff]  }
 0x11e   :  { %v2868_v49 = vadd.f32 %v1905_v40, %v495_v27  ;;  %v515_v51 = vrot.slane %v514_v45, 1  ;;  %v507_v57 = vadd.f32 %v506_v43, %v505_v35  ;;  %v2548_v27 = vld [vmem:[%s3245_s2 + $0x18] sm:$0xff]   ;;  %v2554_v35 = vld [vmem:[%s3245_s2 + $0x28] sm:$0xff]   ;;  %v2557_v39 = vld [vmem:[%s3245_s2 + $0x30] sm:$0xff]  }
 0x11f   :  { %v2558_v40 = vld [vmem:[%s3245_s2 + $0xb8] sm:$0xff]  }
 0x120   :  { %v670_v54 = vadd.f32 %v2868_v49, %v2866_v31  ;;  %v678_v55 = vmul.f32 %v2868_v49, %v2868_v49  ;;  %v516_v58 = vadd.f32 %v515_v51, %v514_v45  ;;  %v2560_v43 = vld [vmem:[%s3245_s2 + $0x38] sm:$0xff]  }
 0x122   :  { %v671_v61 = vrot.slane %v670_v54, 4  ;;  %v679_v62 = vadd.f32 %v678_v55, %v677_v52  ;;  %v518_v63 = vsel %vm87_vm5, %v507_v57, %v516_v58  ;;  %v613_v55 = vlaneseq }
 0x123   :  { %2166 = vmatmul.mubr.f32.vlgmr.msra.gmra.mrb[12].mxu0 %v518_v63 }
 0x124   :  { %v672_v1 = vadd.f32 %v671_v61, %v670_v54  ;;  %v680_v2 = vrot.slane %v679_v62, 4  ;;  %1955 = vmatpush3.bf16.msra.mxu0 %v2539_v17  ;;  %v614_v58 = vshrl.u32 %v613_v55, 7  ;;  %v667_v55 = vld [vmem:[#allocation2 + $0x8] sm:$0x1] }
 0x125   :  { %1956 = vmatprep.subr.bf16.mxu0 %v2541_v19 }
 0x126   :  { %v673_v3 = vrot.slane %v672_v1, 2  ;;  %v681_v4 = vadd.f32 %v680_v2, %v679_v62  ;;  %v2961_v61 = vsub.s32 0, %v614_v58 }
 0x128   :  { %v674_v5 = vadd.f32 %v673_v3, %v672_v1  ;;  %v682_v6 = vrot.slane %v681_v4, 2  ;;  %1957 = vmatpush3.bf16.msra.mxu0 %v2542_v20 }
 0x129   :  { %1958 = vmatprep.subr.bf16.mxu0 %v2544_v22 }
 0x12a   :  { %v675_v8 = vrot.slane %v674_v5, 1  ;;  %v683_v9 = vadd.f32 %v682_v6, %v681_v4  ;;  %v2964_v4 = vsub.s32 1, %v614_v58 }
 0x12c   :  { %v684_v10 = vrot.slane %v683_v9, 1  ;;  %v676_v12 = vadd.f32 %v675_v8, %v674_v5  ;;  %1959 = vmatpush3.bf16.msra.mxu0 %v2545_v24 }
 0x12d   :  { %1960 = vmatprep.subr.bf16.mxu0 %v2547_v26 }
 0x12e   :  { %v685_v13 = vadd.f32 %v684_v10, %v683_v9 }
 0x130   :  { %v686_v14 = vsel %vm87_vm5, %v676_v12, %v685_v13  ;;  %1961 = vmatpush3.bf16.msra.mxu0 %v2548_v27 }
 0x131   :  { %2201 = vmatmul.mubr.f32.vlgmr.msra.gmra.mrb[12].mxu1 %v686_v14  ;;  %1962 = vmatprep.subr.bf16.mxu0 %v2550_v29 }
 0x132   :  { %2219 = vmatprep.mubr.msk.bf16.mxu1 %vm2619_vm0, %v2617_v0  ;;  %2204 = vmatpush3.bf16.msra.mxu1 %v2537_v15 }
 0x133   :  { %2205 = vmatprep.subr.bf16.mxu1 %v2617_v0 }
 0x134   :  { %1963 = vmatpush3.bf16.msra.mxu0 %v2551_v30 }
 0x135   :  { %1964 = vmatprep.subr.bf16.mxu0 %v2553_v34 }
 0x136   :  { %2206 = vmatpush3.bf16.msra.mxu1 %v2540_v18 }
 0x137   :  { %2207 = vmatprep.subr.bf16.mxu1 %v2617_v0 }
 0x138   :  { %1965 = vmatpush3.bf16.msra.mxu0 %v2554_v35 }
 0x139   :  { %1966 = vmatprep.subr.bf16.mxu0 %v2556_v38 }
 0x13a   :  { %2208 = vmatpush3.bf16.msra.mxu1 %v2543_v21 }
 0x13b   :  { %2209 = vmatprep.subr.bf16.mxu1 %v2617_v0 }
 0x13c   :  { %1967 = vmatpush3.bf16.msra.mxu0 %v2557_v39 }
 0x13d   :  { %1968 = vmatprep.subr.bf16.mxu0 %v2559_v41 }
 0x13e   :  { %2210 = vmatpush3.bf16.msra.mxu1 %v2546_v25 }
 0x13f   :  { %2211 = vmatprep.subr.bf16.mxu1 %v2617_v0 }
 0x140   :  { %1969 = vmatpush3.bf16.msra.mxu0 %v2560_v43 }
 0x141   :  { %2390 = vmatprep.subr.bf16.mxu0 %v2620_v59 }
 0x142   :  { %2212 = vmatpush3.bf16.msra.mxu1 %v2549_v28 }
 0x143   :  { %2213 = vmatprep.subr.bf16.mxu1 %v2617_v0 }
 0x146   :  { %2214 = vmatpush3.bf16.msra.mxu1 %v2552_v33 }
 0x147   :  { %2215 = vmatprep.subr.bf16.mxu1 %v2617_v0 }
 0x14a   :  { %2216 = vmatpush3.bf16.msra.mxu1 %v2555_v36 }
 0x14b   :  { %2217 = vmatprep.subr.bf16.mxu1 %v2617_v0 }
 0x14e   :  { %2218 = vmatpush3.bf16.msra.mxu1 %v2558_v40 }
 0x14f   :  { %2414 = vmatprep.subr.bf16.mxu1 %v2620_v59 }
 0x1f6   :  { %v601_v45 = vpop.f32.mrb[12].mxu0 }
 0x1f7   :  { %v605_v48 = vmul.f32 %v601_v45, %v601_v45  ;;  %v2167_v51 = vpop.f32.mrb[13].mxu0  ;;  %v616_v3 = vrot.slane %v601_v45, %v2961_v61 }
 0x1f8   :  { %v663_v51 = vld [vmem:[#allocation2] sm:$0xf] }
 0x1f9   :  { %v607_v52 = vrot.slane %v605_v48, 7  ;;  %v617_v9 = vsub.f32 %v2856_v7, %v616_v3  ;;  %v618_v10 = vsub.f32 %v2858_v11, %v616_v3 }
 0x1fb   :  { %v609_v54 = vsub.f32 %v601_v45, %v607_v52 }
 0x1fd   :  { %v610_v57 = vmax.f32 %v609_v54, 0.0 }
 0x1ff   :  { %v611_v0 = vadd.f32 1e-05, %v610_v57 }
 0x201   :  { %2565 = vrsqrt.f32 %v611_v0 }
 0x204   :  { %v769_v62 = vpop.f32.mrb[12].mxu1 }
 0x205   :  { %v773_v63 = vmul.f32 %v769_v62, %v769_v62  ;;  %v2202_v1 = vpop.f32.mrb[13].mxu1  ;;  %v784_v20 = vrot.slane %v769_v62, %v2961_v61 }
 0x207   :  { %v775_v2 = vrot.slane %v773_v63, 7  ;;  %v785_v22 = vsub.f32 %v2866_v31, %v784_v20  ;;  %v786_v7 = vsub.f32 %v2868_v49, %v784_v20 }
 0x209   :  { %v777_v5 = vsub.f32 %v769_v62, %v775_v2 }
 0x20b   :  { %v2566_v6 = vpop.eup %2565  ;;  %v778_v8 = vmax.f32 %v777_v5, 0.0 }
 0x20c   :  { %v622_v12 = vrot.slane %v2566_v6, %v2964_v4 }
 0x20d   :  { %v779_v13 = vadd.f32 1e-05, %v778_v8 }
 0x20e   :  { %v623_v14 = vmul.f32 %v622_v12, %v617_v9  ;;  %v624_v15 = vmul.f32 %v622_v12, %v618_v10 }
 0x20f   :  { %2567 = vrsqrt.f32 %v779_v13 }
 0x210   :  { %v627_v16 = vmin.f32 %v623_v14, 0.0  ;;  %v628_v17 = vmin.f32 %v624_v15, 0.0  ;;  %vm625_vm11 = vcmp.gt.f32.partialorder %v623_v14, 0.0  ;;  %vm626_vm12 = vcmp.gt.f32.partialorder %v624_v15, 0.0 }
 0x212   :  { %v629_v18 = vmul.f32 1.442695, %v627_v16  ;;  %v631_v19 = vmul.f32 1.442695, %v628_v17 }
 0x214   :  { %2569 = vpow2.f32 %v629_v18  ;;  %v831_v18 = vld [vmem:[#allocation2 + $0xc] sm:$0xf] }
 0x215   :  { %2571 = vpow2.f32 %v631_v19 }
 0x219   :  { %v2568_v21 = vpop.eup %2567 }
 0x21a   :  { %v790_v11 = vrot.slane %v2568_v21, %v2964_v4  ;;  %v835_v21 = vld [vmem:[#allocation2 + $0x14] sm:$0x1] }
 0x21c   :  { %v791_v24 = vmul.f32 %v790_v11, %v785_v22  ;;  %v792_v25 = vmul.f32 %v790_v11, %v786_v7 }
 0x21e   :  { %v2570_v26 = vpop.eup %2569  ;;  %v795_v27 = vmin.f32 %v791_v24, 0.0  ;;  %v796_v28 = vmin.f32 %v792_v25, 0.0  ;;  %vm793_vm13 = vcmp.gt.f32.partialorder %v791_v24, 0.0  ;;  %vm794_vm14 = vcmp.gt.f32.partialorder %v792_v25, 0.0 }
 0x21f   :  { %v2572_v29 = vpop.eup %2571  ;;  %v1823_v30 = vadd.f32 -1.0, %v2570_v26 }
 0x220   :  { %v1824_v33 = vadd.f32 -1.0, %v2572_v29  ;;  %v797_v34 = vmul.f32 1.442695, %v795_v27  ;;  %v799_v35 = vmul.f32 1.442695, %v796_v28 }
 0x221   :  { %v635_v36 = vsel %vm625_vm11, %v623_v14, %v1823_v30 }
 0x222   :  { %v636_v38 = vsel %vm626_vm12, %v624_v15, %v1824_v33  ;;  %v1871_v39 = vpack.c.bf16 %v635_v36, %v635_v36  ;;  %2573 = vpow2.f32 %v797_v34 }
 0x223   :  { %v1872_v31 = vpack.c.bf16 %v636_v38, %v636_v38  ;;  %2575 = vpow2.f32 %v799_v35 }
 0x224   :  { %v644_v49 = vshrl.u32 %v1871_v39, 16  ;;  %v647_v43 = vshll.u32 %v1871_v39, 16 }
 0x225   :  { %v652_v40 = vshrl.u32 %v1872_v31, 16  ;;  %v655_v48 = vshll.u32 %v1872_v31, 16 }
 0x226   :  { %v646_v41 = vrot.slane %v644_v49, 7 }
 0x227   :  { %v654_v45 = vrot.slane %v652_v40, 7 }
 0x228   :  { %v649_v52 = vor.u32 %v647_v43, %v646_v41  ;;  %v650_v54 = vrot.slane %v646_v41, 4  ;;  %v2987_v41 = vld [vmem:[#allocation3] sm:$0xff]  ;;  %v2564_v43 = vld [vmem:[#allocation2 + $0x18] ss:$0 sps:$4 sm:$0xff]  }
 0x229   :  { %v657_v57 = vor.u32 %v655_v48, %v654_v45  ;;  %v659_v0 = vrot.slane %v654_v45, 4 }
 0x22a   :  { %v664_v58 = vsel %vm2771_vm7, %v649_v52, %v663_v51  ;;  %v890_v51 = vshll.u32 %v2564_v43, 16 }
 0x22b   :  { %v658_v62 = vsel %vm2764_vm6, %v650_v54, %v657_v57  ;;  %665 = vst [vmem:[#allocation2] sm:$0xf] %v664_v58  ;;  %v668_v63 = vsel %vm2777_vm8, %v659_v0, %v667_v55  ;;  %v902_v0 = vrot.slane %v2564_v43, 1 }
 0x22c   :  { %v2574_v1 = vpop.eup %2573  ;;  %666 = vst [vmem:[#allocation2 + $0x4] sm:$0xf] %v658_v62  ;;  %669 = vst [vmem:[#allocation2 + $0x8] sm:$0x1] %v668_v63  ;;  %v892_v57 = vrot.slane %v890_v51, 1 }
 0x22d   :  { %v2576_v2 = vpop.eup %2575  ;;  %v1827_v3 = vadd.f32 -1.0, %v2574_v1 }
 0x22e   :  { %v1828_v5 = vadd.f32 -1.0, %v2576_v2 }
 0x22f   :  { %v803_v6 = vsel %vm793_vm13, %v791_v24, %v1827_v3 }
 0x230   :  { %v804_v8 = vsel %vm794_vm14, %v792_v25, %v1828_v5  ;;  %v1873_v9 = vpack.c.bf16 %v803_v6, %v803_v6 }
 0x231   :  { %v1874_v10 = vpack.c.bf16 %v804_v8, %v804_v8 }
 0x232   :  { %v812_v12 = vshrl.u32 %v1873_v9, 16  ;;  %v815_v15 = vshll.u32 %v1873_v9, 16 }
 0x233   :  { %v820_v13 = vshrl.u32 %v1874_v10, 16  ;;  %v823_v17 = vshll.u32 %v1874_v10, 16  ;;  %v2561_v26 = vld [vmem:[#allocation2] sm:$0xff]  }
 0x234   :  { %v814_v14 = vrot.slane %v812_v12, 7  ;;  %v869_v27 = vshll.u32 %v2561_v26, 16  ;;  %v897_v33 = vrot.slane %v2561_v26, 1  ;;  %v867_v35 = vshrl.u32 %v2561_v26, 16 }
 0x235   :  { %v822_v16 = vrot.slane %v820_v13, 7 }
 0x236   :  { %v817_v19 = vor.u32 %v815_v15, %v814_v14  ;;  %v818_v20 = vrot.slane %v814_v14, 4  ;;  %v871_v29 = vrot.slane %v869_v27, 1 }
 0x237   :  { %v825_v22 = vor.u32 %v823_v17, %v822_v16  ;;  %v827_v7 = vrot.slane %v822_v16, 4 }
 0x238   :  { %v832_v11 = vsel %vm2771_vm7, %v817_v19, %v831_v18  ;;  %v872_v39 = vor.u32 %v871_v29, %v867_v35 }
 0x239   :  { %v826_v24 = vsel %vm2764_vm6, %v818_v20, %v825_v22  ;;  %833 = vst [vmem:[#allocation2 + $0xc] sm:$0xf] %v832_v11  ;;  %v836_v25 = vsel %vm2777_vm8, %v827_v7, %v835_v21 }
 0x23a   :  { %834 = vst [vmem:[#allocation2 + $0x10] sm:$0xf] %v826_v24  ;;  %837 = vst [vmem:[#allocation2 + $0x14] sm:$0x1] %v836_v25 }
 0x240   :  { %v2562_v28 = vld [vmem:[#allocation2 + $0x8] sm:$0xff]  }
 0x241   :  { %v2563_v30 = vld [vmem:[#allocation2 + $0x10] sm:$0xff]   ;;  %v898_v34 = vrot.slane %v2562_v28, 1  ;;  %v874_v36 = vshll.u32 %v2562_v28, 16  ;;  %v878_v31 = vshrl.u32 %v2562_v28, 16 }
 0x242   :  { %v882_v44 = vshll.u32 %v2563_v30, 16  ;;  %v900_v48 = vrot.slane %v2563_v30, 1  ;;  %v886_v52 = vshrl.u32 %v2563_v30, 16 }
 0x243   :  { %v899_v38 = vsel %vm188_vm10, %v897_v33, %v898_v34  ;;  %v876_v37 = vrot.slane %v874_v36, 1 }
 0x244   :  { %2220 = vmatmul.mubr.bf16.vlgmr.msra.gmra.mrb[16].mxu1 %v899_v38  ;;  %v884_v40 = vrot.slane %v882_v44, 1  ;;  %v901_v54 = vsel %vm188_vm10, %v898_v34, %v900_v48 }
 0x245   :  { %v877_v47 = vsel %vm156_vm9, %v872_v39, %v876_v37  ;;  %v880_v49 = vor.u32 %v878_v31, %v876_v37  ;;  %2223 = vmatprep.mubr.msk.bf16.mxu1 %vm2619_vm0, %v2987_v41  ;;  %2416 = vmatpush3.bf16.msra.mxu1 %v2796_v23 }
 0x246   :  { %1131 = vmatprep.mubr.bf16.mxu0 %v877_v47  ;;  %2417 = vmatprep.subr.bf16.mxu1 %v2620_v59  ;;  %v888_v55 = vor.u32 %v886_v52, %v884_v40 }
 0x247   :  { %1132 = vmatmul.mubr.bf16.vlgmr.msra.gmra.mrb[16].mxu0 %v2561_v26  ;;  %v885_v45 = vsel %vm156_vm9, %v880_v49, %v884_v40 }
 0x248   :  { %1139 = vmatprep.mubr.bf16.mxu0 %v885_v45  ;;  %2392 = vmatpush3.bf16.msra.mxu0 %v2796_v23  ;;  %v893_v23 = vsel %vm156_vm9, %v888_v55, %v892_v57 }
 0x249   :  { %2393 = vmatprep.subr.bf16.mxu0 %v2620_v59  ;;  %2419 = vmatpush3.bf16.msra.mxu1 %v2804_v32 }
 0x24a   :  { %2420 = vmatprep.subr.bf16.mxu1 %v2620_v59 }
 0x24c   :  { %2224 = vmatmul.mubr.bf16.gmra.mrb[20].mxu1 %v901_v54  ;;  %2395 = vmatpush3.bf16.msra.mxu0 %v2804_v32  ;;  %v903_v32 = vsel %vm188_vm10, %v900_v48, %v902_v0 }
 0x24d   :  { %2227 = vmatprep.mubr.msk.bf16.mxu1 %vm2619_vm0, %v2987_v41  ;;  %2396 = vmatprep.subr.bf16.mxu0 %v2620_v59 }
 0x24e   :  { %2422 = vmatpush3.bf16.msra.mxu1 %v2821_v42 }
 0x24f   :  { %1140 = vmatmul.mubr.bf16.gmra.mrb[20].mxu0 %v2562_v28  ;;  %2423 = vmatprep.subr.bf16.mxu1 %v2620_v59 }
 0x250   :  { %1146 = vmatprep.mubr.bf16.mxu0 %v893_v23  ;;  %2398 = vmatpush3.bf16.msra.mxu0 %v2821_v42 }
 0x251   :  { %2399 = vmatprep.subr.bf16.mxu0 %v2620_v59 }
 0x252   :  { %2425 = vmatpush3.bf16.msra.mxu1 %v2827_v46 }
 0x253   :  { %2426 = vmatprep.subr.bf16.mxu1 %v2620_v59 }
 0x254   :  { %2228 = vmatmul.mubr.bf16.gmra.mrb[24].mxu1 %v903_v32  ;;  %2401 = vmatpush3.bf16.msra.mxu0 %v2827_v46 }
 0x255   :  { %2402 = vmatprep.subr.bf16.mxu0 %v2620_v59  ;;  %2298 = vmatprep.mubr.msk.f32.mxu1 %vm2619_vm0, %v2987_v41 }
 0x256   :  { %2428 = vmatpush3.bf16.msra.mxu1 %v2833_v50 }
 0x257   :  { %1147 = vmatmul.mubr.bf16.gmra.mrb[24].mxu0 %v2563_v30  ;;  %2429 = vmatprep.subr.bf16.mxu1 %v2620_v59 }
 0x258   :  { %2404 = vmatpush3.bf16.msra.mxu0 %v2833_v50  ;;  %2263 = vmatprep.mubr.msk.f32.mxu0 %vm2619_vm0, %v2987_v41 }
 0x259   :  { %2405 = vmatprep.subr.bf16.mxu0 %v2620_v59 }
 0x25a   :  { %2431 = vmatpush3.bf16.msra.mxu1 %v2839_v53 }
 0x25b   :  { %2432 = vmatprep.subr.bf16.mxu1 %v2620_v59 }
 0x25c   :  { %2407 = vmatpush3.bf16.msra.mxu0 %v2839_v53 }
 0x25d   :  { %2408 = vmatprep.subr.bf16.mxu0 %v2620_v59 }
 0x25e   :  { %2434 = vmatpush3.bf16.msra.mxu1 %v2845_v56 }
 0x25f   :  { %2435 = vmatprep.subr.bf16.mxu1 %v2620_v59 }
 0x260   :  { %2410 = vmatpush3.bf16.msra.mxu0 %v2845_v56 }
 0x261   :  { %2411 = vmatprep.subr.bf16.mxu0 %v2620_v59 }
 0x262   :  { %2437 = vmatpush3.bf16.msra.mxu1 %v2851_v60 }
 0x264   :  { %2413 = vmatpush3.bf16.msra.mxu0 %v2851_v60 }
 0x317   :  { %v1188_v42 = vpop.f32.mrb[16].mxu1 }
 0x318   :  { %v2221_v46 = vpop.f32.mrb[17].mxu1 }
 0x319   :  { %v1191_v50 = vpop.f32.mrb[18].mxu1 }
 0x31a   :  { %v1970_v58 = vpop.f32.mrb[16].mxu0  ;;  %v2222_v62 = vpop.f32.mrb[19].mxu1 }
 0x31b   :  { %v1971_v53 = vpop.f32.mrb[17].mxu0 }
 0x31c   :  { %v1972_v63 = vadd.f32 %v1971_v53, %v1970_v58  ;;  %v1973_v1 = vpop.f32.mrb[18].mxu0  ;;  %v1553_v53 = vld [vmem:[%s3246_s3 + $0x80] sm:$0xff] }
 0x31d   :  { %v1974_v2 = vpop.f32.mrb[19].mxu0 }
 0x31e   :  { %v3031_v3 = vadd.f32 %v1972_v63, %v1188_v42  ;;  %v1975_v5 = vadd.f32 %v1974_v2, %v1973_v1  ;;  %v1554_v63 = vld [vmem:[%s3246_s3 + $0x88] sm:$0xff]  ;;  %v1569_v1 = vld [vmem:[%s3246_s3 + $0x100] sm:$0xff] }
 0x31f   :  { %v1196_v6 = vpop.f32.mrb[20].mxu1  ;;  %v2438_v2 = vpack.c.bf16 %v1554_v63, %v1553_v53  ;;  %v1582_v63 = vld [vmem:[%s3246_s3 + $0x168] sm:$0xff] }
 0x320   :  { %v3033_v56 = vadd.f32 %v1975_v5, %v1191_v50  ;;  %v2225_v59 = vpop.f32.mrb[21].mxu1  ;;  %v1216_v60 = vmul.f32 %v3031_v3, %v3031_v3  ;;  %v1570_v5 = vld [vmem:[%s3246_s3 + $0x108] sm:$0xff]  ;;  %v1537_v6 = vld [vmem:[%s3246_s3] sm:$0xff] }
 0x321   :  { %v1198_v8 = vpop.f32.mrb[22].mxu1  ;;  %v1538_v59 = vld [vmem:[%s3246_s3 + $0x8] sm:$0xff]  ;;  %2439 = vmatprep.subr.bf16.mxu0 %v2438_v2 }
 0x322   :  { %v1209_v9 = vadd.f32 %v3033_v56, %v3031_v3  ;;  %v1217_v10 = vmul.f32 %v3033_v56, %v3033_v56  ;;  %v1976_v12 = vpop.f32.mrb[20].mxu0  ;;  %v2226_v13 = vpop.f32.mrb[23].mxu1  ;;  %v1550_v2 = vld [vmem:[%s3246_s3 + $0x68] sm:$0xff] }
 0x323   :  { %v1977_v14 = vpop.f32.mrb[21].mxu0  ;;  %v1571_v12 = vld [vmem:[%s3246_s3 + $0x110] sm:$0xff] }
 0x324   :  { %v1210_v15 = vrot.slane %v1209_v9, 4  ;;  %v1218_v16 = vadd.f32 %v1217_v10, %v1216_v60  ;;  %v1979_v17 = vpop.f32.mrb[22].mxu0  ;;  %v2440_v60 = vpack.c.bf16 %v1538_v59, %v1537_v6  ;;  %v1556_v10 = vld [vmem:[%s3246_s3 + $0x98] sm:$0xff]  ;;  %v1567_v59 = vld [vmem:[%s3246_s3 + $0xf0] sm:$0xff] }
 0x325   :  { %v1980_v18 = vpop.f32.mrb[23].mxu0  ;;  %v1572_v14 = vld [vmem:[%s3246_s3 + $0x118] sm:$0xff] }
 0x326   :  { %v1211_v19 = vadd.f32 %v1210_v15, %v1209_v9  ;;  %v1219_v20 = vrot.slane %v1218_v16, 4  ;;  %v1981_v21 = vadd.f32 %v1980_v18, %v1979_v17  ;;  %v1555_v9 = vld [vmem:[%s3246_s3 + $0x90] sm:$0xff]  ;;  %v2474_v17 = vpack.c.bf16 %v1572_v14, %v1571_v12 }
 0x327   :  { %v1203_v22 = vpop.f32.mrb[24].mxu1  ;;  %v2442_v13 = vpack.c.bf16 %v1556_v10, %v1555_v9  ;;  %v1539_v15 = vld [vmem:[%s3246_s3 + $0x10] sm:$0xff]  ;;  %v1584_v10 = vld [vmem:[%s3246_s3 + $0x178] sm:$0xff] }
 0x328   :  { %v1212_v7 = vrot.slane %v1211_v19, 2  ;;  %v1220_v11 = vadd.f32 %v1219_v20, %v1218_v16  ;;  %v3041_v26 = vadd.f32 %v1981_v21, %v1198_v8  ;;  %v2229_v24 = vpop.f32.mrb[25].mxu1  ;;  %v2470_v8 = vpack.c.bf16 %v1570_v5, %v1569_v1  ;;  %v1540_v16 = vld [vmem:[%s3246_s3 + $0x18] sm:$0xff]  ;;  %v1558_v20 = vld [vmem:[%s3246_s3 + $0xa8] sm:$0xff]  ;;  %v1573_v21 = vld [vmem:[%s3246_s3 + $0x120] sm:$0xff] }
 0x329   :  { %v1206_v25 = vpop.f32.mrb[26].mxu1  ;;  %v2444_v18 = vpack.c.bf16 %v1540_v16, %v1539_v15  ;;  %v1542_v24 = vld [vmem:[%s3246_s3 + $0x28] sm:$0xff]  ;;  %v1549_v1 = vld [vmem:[%s3246_s3 + $0x60] sm:$0xff]  ;;  %v1551_v12 = vld [vmem:[%s3246_s3 + $0x70] sm:$0xff] }
 0x32a   :  { %v1213_v27 = vadd.f32 %v1212_v7, %v1211_v19  ;;  %v1221_v28 = vrot.slane %v1220_v11, 2  ;;  %v1982_v29 = vpop.f32.mrb[24].mxu0  ;;  %v2230_v30 = vpop.f32.mrb[27].mxu1  ;;  %v1353_v31 = vmul.f32 %v3041_v26, %v3041_v26  ;;  %2471 = vmatprep.subr.bf16.mxu1 %v2470_v8  ;;  %v1557_v19 = vld [vmem:[%s3246_s3 + $0xa0] sm:$0xff]  ;;  %v1574_v7 = vld [vmem:[%s3246_s3 + $0x128] sm:$0xff]  ;;  %v2464_v6 = vpack.c.bf16 %v1550_v2, %v1549_v1 }
 0x32b   :  { %v1983_v33 = vpop.f32.mrb[25].mxu0  ;;  %v2478_v25 = vpack.c.bf16 %v1574_v7, %v1573_v21  ;;  %v1575_v30 = vld [vmem:[%s3246_s3 + $0x130] sm:$0xff] }
 0x32c   :  { %v1984_v34 = vadd.f32 %v1983_v33, %v1982_v29  ;;  %v1985_v35 = vpop.f32.mrb[26].mxu0  ;;  %v1214_v36 = vrot.slane %v1213_v27, 1  ;;  %v1222_v44 = vadd.f32 %v1221_v28, %v1220_v11  ;;  %v1541_v11 = vld [vmem:[%s3246_s3 + $0x20] sm:$0xff]  ;;  %v1559_v28 = vld [vmem:[%s3246_s3 + $0xb0] sm:$0xff]  ;;  %v1560_v29 = vld [vmem:[%s3246_s3 + $0xb8] sm:$0xff] }
 0x32d   :  { %v1986_v38 = vpop.f32.mrb[27].mxu0  ;;  %v2450_v33 = vpack.c.bf16 %v1560_v29, %v1559_v28  ;;  %v1543_v35 = vld [vmem:[%s3246_s3 + $0x30] sm:$0xff] }
 0x32e   :  { %v3043_v39 = vadd.f32 %v1984_v34, %v1203_v22  ;;  %v1223_v37 = vrot.slane %v1222_v44, 1  ;;  %v1215_v40 = vadd.f32 %v1214_v36, %v1213_v27  ;;  %v2446_v22 = vpack.c.bf16 %v1558_v20, %v1557_v19  ;;  %v1576_v34 = vld [vmem:[%s3246_s3 + $0x138] sm:$0xff] }
 0x32f   :  { %v2448_v27 = vpack.c.bf16 %v1542_v24, %v1541_v11  ;;  %v1544_v36 = vld [vmem:[%s3246_s3 + $0x38] sm:$0xff] }
 0x330   :  { %v1346_v47 = vadd.f32 %v3043_v39, %v3041_v26  ;;  %v1354_v49 = vmul.f32 %v3043_v39, %v3043_v39  ;;  %v1224_v43 = vadd.f32 %v1223_v37, %v1222_v44  ;;  %v2482_v44 = vpack.c.bf16 %v1576_v34, %v1575_v30  ;;  %v1561_v37 = vld [vmem:[%s3246_s3 + $0xc0] sm:$0xff] }
 0x331   :  { %v2452_v38 = vpack.c.bf16 %v1544_v36, %v1543_v35 }
 0x332   :  { %v1347_v45 = vrot.slane %v1346_v47, 4  ;;  %v1355_v48 = vadd.f32 %v1354_v49, %v1353_v31  ;;  %v1225_v51 = vsel %vm87_vm5, %v1215_v40, %v1224_v43  ;;  %v1562_v31 = vld [vmem:[%s3246_s3 + $0xc8] sm:$0xff]  ;;  %v1545_v43 = vld [vmem:[%s3246_s3 + $0x40] sm:$0xff] }
 0x333   :  { %2264 = vmatmul.mubr.f32.vlgmr.msra.gmra.mrb[14].mxu0 %v1225_v51  ;;  %v2454_v49 = vpack.c.bf16 %v1562_v31, %v1561_v37  ;;  %v1578_v40 = vld [vmem:[%s3246_s3 + $0x148] sm:$0xff] }
 0x334   :  { %v1348_v52 = vadd.f32 %v1347_v45, %v1346_v47  ;;  %v1356_v54 = vrot.slane %v1355_v48, 4  ;;  %2441 = vmatpush3.bf16.msra.mxu0 %v2440_v60  ;;  %v1577_v47 = vld [vmem:[%s3246_s3 + $0x140] sm:$0xff]  ;;  %v1546_v45 = vld [vmem:[%s3246_s3 + $0x48] sm:$0xff]  ;;  %v1583_v60 = vld [vmem:[%s3246_s3 + $0x170] sm:$0xff] }
 0x335   :  { %2443 = vmatprep.subr.bf16.mxu0 %v2442_v13  ;;  %v2456_v51 = vpack.c.bf16 %v1546_v45, %v1545_v43  ;;  %v1552_v13 = vld [vmem:[%s3246_s3 + $0x78] sm:$0xff]  ;;  %v2498_v14 = vpack.c.bf16 %v1584_v10, %v1583_v60 }
 0x336   :  { %v1349_v55 = vrot.slane %v1348_v52, 2  ;;  %v1357_v57 = vadd.f32 %v1356_v54, %v1355_v48  ;;  %v2486_v48 = vpack.c.bf16 %v1578_v40, %v1577_v47  ;;  %v1564_v54 = vld [vmem:[%s3246_s3 + $0xd8] sm:$0xff]  ;;  %v2468_v15 = vpack.c.bf16 %v1552_v13, %v1551_v12 }
 0x338   :  { %v1350_v23 = vadd.f32 %v1349_v55, %v1348_v52  ;;  %v1358_v0 = vrot.slane %v1357_v57, 2  ;;  %2445 = vmatpush3.bf16.msra.mxu0 %v2444_v18  ;;  %v1563_v52 = vld [vmem:[%s3246_s3 + $0xd0] sm:$0xff] }
 0x339   :  { %2447 = vmatprep.subr.bf16.mxu0 %v2446_v22  ;;  %v1579_v55 = vld [vmem:[%s3246_s3 + $0x150] sm:$0xff] }
 0x33a   :  { %v1351_v32 = vrot.slane %v1350_v23, 1  ;;  %v1359_v42 = vadd.f32 %v1358_v0, %v1357_v57  ;;  %v2458_v57 = vpack.c.bf16 %v1564_v54, %v1563_v52  ;;  %v1547_v0 = vld [vmem:[%s3246_s3 + $0x50] sm:$0xff] }
 0x33c   :  { %v1360_v46 = vrot.slane %v1359_v42, 1  ;;  %v1352_v50 = vadd.f32 %v1351_v32, %v1350_v23  ;;  %2449 = vmatpush3.bf16.msra.mxu0 %v2448_v27  ;;  %v1580_v23 = vld [vmem:[%s3246_s3 + $0x158] sm:$0xff] }
 0x33d   :  { %2451 = vmatprep.subr.bf16.mxu0 %v2450_v33  ;;  %v1548_v32 = vld [vmem:[%s3246_s3 + $0x58] sm:$0xff] }
 0x33e   :  { %v1361_v58 = vadd.f32 %v1360_v46, %v1359_v42  ;;  %v2490_v42 = vpack.c.bf16 %v1580_v23, %v1579_v55  ;;  %v2460_v46 = vpack.c.bf16 %v1548_v32, %v1547_v0 }
 0x340   :  { %v1362_v62 = vsel %vm87_vm5, %v1352_v50, %v1361_v58  ;;  %2453 = vmatpush3.bf16.msra.mxu0 %v2452_v38  ;;  %v1565_v50 = vld [vmem:[%s3246_s3 + $0xe0] sm:$0xff]  ;;  %v1566_v58 = vld [vmem:[%s3246_s3 + $0xe8] sm:$0xff] }
 0x341   :  { %2299 = vmatmul.mubr.f32.vlgmr.msra.gmra.mrb[14].mxu1 %v1362_v62  ;;  %2455 = vmatprep.subr.bf16.mxu0 %v2454_v49  ;;  %v1581_v62 = vld [vmem:[%s3246_s3 + $0x160] sm:$0xff]  ;;  %v2462_v53 = vpack.c.bf16 %v1566_v58, %v1565_v50 }
 0x342   :  { %2473 = vmatpush3.bf16.msra.mxu1 %v2470_v8  ;;  %v2494_v5 = vpack.c.bf16 %v1582_v63, %v1581_v62  ;;  %v1568_v8 = vld [vmem:[%s3246_s3 + $0xf8] sm:$0xff] }
 0x343   :  { %2475 = vmatprep.subr.bf16.mxu1 %v2474_v17  ;;  %v2466_v9 = vpack.c.bf16 %v1568_v8, %v1567_v59 }
 0x344   :  { %2457 = vmatpush3.bf16.msra.mxu0 %v2456_v51 }
 0x345   :  { %2459 = vmatprep.subr.bf16.mxu0 %v2458_v57 }
 0x346   :  { %2477 = vmatpush3.bf16.msra.mxu1 %v2474_v17 }
 0x347   :  { %2479 = vmatprep.subr.bf16.mxu1 %v2478_v25 }
 0x348   :  { %2461 = vmatpush3.bf16.msra.mxu0 %v2460_v46 }
 0x349   :  { %2463 = vmatprep.subr.bf16.mxu0 %v2462_v53 }
 0x34a   :  { %2481 = vmatpush3.bf16.msra.mxu1 %v2478_v25 }
 0x34b   :  { %2483 = vmatprep.subr.bf16.mxu1 %v2482_v44 }
 0x34c   :  { %2465 = vmatpush3.bf16.msra.mxu0 %v2464_v6 }
 0x34d   :  { %2467 = vmatprep.subr.bf16.mxu0 %v2466_v9 }
 0x34e   :  { %2485 = vmatpush3.bf16.msra.mxu1 %v2482_v44 }
 0x34f   :  { %2487 = vmatprep.subr.bf16.mxu1 %v2486_v48 }
 0x350   :  { %2469 = vmatpush3.bf16.msra.mxu0 %v2468_v15 }
 0x352   :  { %2489 = vmatpush3.bf16.msra.mxu1 %v2486_v48 }
 0x353   :  { %2491 = vmatprep.subr.bf16.mxu1 %v2490_v42 }
 0x356   :  { %2493 = vmatpush3.bf16.msra.mxu1 %v2490_v42 }
 0x357   :  { %2495 = vmatprep.subr.bf16.mxu1 %v2494_v5 }
 0x35a   :  { %2497 = vmatpush3.bf16.msra.mxu1 %v2494_v5 }
 0x35b   :  { %2499 = vmatprep.subr.bf16.mxu1 %v2498_v14 }
 0x35e   :  { %2501 = vmatpush3.bf16.msra.mxu1 %v2498_v14 }
 0x406   :  { %v1308_v16 = vpop.f32.mrb[14].mxu0 }
 0x407   :  { %v1312_v17 = vmul.f32 %v1308_v16, %v1308_v16  ;;  %v2265_v18 = vpop.f32.mrb[15].mxu0  ;;  %v1323_v27 = vrot.slane %v1308_v16, %v2961_v61 }
 0x409   :  { %v1314_v19 = vrot.slane %v1312_v17, 7  ;;  %v1324_v33 = vsub.f32 %v3031_v3, %v1323_v27  ;;  %v1325_v34 = vsub.f32 %v3033_v56, %v1323_v27 }
 0x40b   :  { %v1316_v20 = vsub.f32 %v1308_v16, %v1314_v19 }
 0x40d   :  { %v1317_v21 = vmax.f32 %v1316_v20, 0.0 }
 0x40f   :  { %v1318_v22 = vadd.f32 1e-05, %v1317_v21 }
 0x411   :  { %2577 = vrsqrt.f32 %v1318_v22 }
 0x414   :  { %v1445_v7 = vpop.f32.mrb[14].mxu1 }
 0x415   :  { %v1449_v11 = vmul.f32 %v1445_v7, %v1445_v7  ;;  %v2300_v24 = vpop.f32.mrb[15].mxu1  ;;  %v1460_v40 = vrot.slane %v1445_v7, %v2961_v61 }
 0x416   :  { %v1529_v24 = vrot.slane %v2987_v41, 2 }
 0x417   :  { %v1451_v25 = vrot.slane %v1449_v11, 7  ;;  %v1461_v45 = vsub.f32 %v3041_v26, %v1460_v40  ;;  %v1462_v3 = vsub.f32 %v3043_v39, %v1460_v40 }
 0x419   :  { %v1453_v28 = vsub.f32 %v1445_v7, %v1451_v25 }
 0x41b   :  { %v2578_v29 = vpop.eup %2577  ;;  %v1454_v30 = vmax.f32 %v1453_v28, 0.0 }
 0x41c   :  { %v1329_v35 = vrot.slane %v2578_v29, %v2964_v4 }
 0x41d   :  { %v1455_v36 = vadd.f32 1e-05, %v1454_v30 }
 0x41e   :  { %v1330_v44 = vmul.f32 %v1329_v35, %v1324_v33  ;;  %v1331_v38 = vmul.f32 %v1329_v35, %v1325_v34  ;;  %v1509_v33 = vrot.slane %v2987_v41, 1 }
 0x41f   :  { %2579 = vrsqrt.f32 %v1455_v36 }
 0x420   :  { %v1334_v37 = vmin.f32 %v1330_v44, 0.0  ;;  %v1335_v31 = vmin.f32 %v1331_v38, 0.0  ;;  %vm1332_vm15 = vcmp.gt.f32.partialorder %v1330_v44, 0.0  ;;  %vm1333_vm0 = vcmp.gt.f32.partialorder %v1331_v38, 0.0 }
 0x422   :  { %v1336_v47 = vmul.f32 1.442695, %v1334_v37  ;;  %v1338_v49 = vmul.f32 1.442695, %v1335_v31  ;;  %v1771_v31 = vld [vmem:[%s3243_s0] sm:$0xff] }
 0x424   :  { %2581 = vpow2.f32 %v1336_v47 }
 0x425   :  { %2583 = vpow2.f32 %v1338_v49 }
 0x429   :  { %v2580_v43 = vpop.eup %2579 }
 0x42a   :  { %v1466_v56 = vrot.slane %v2580_v43, %v2964_v4 }
 0x42c   :  { %v1467_v48 = vmul.f32 %v1466_v56, %v1461_v45  ;;  %v1468_v51 = vmul.f32 %v1466_v56, %v1462_v3  ;;  %v1772_v45 = vld [vmem:[%s3243_s0 + $0x8] sm:$0xff] }
 0x42e   :  { %v2582_v52 = vpop.eup %2581  ;;  %v1471_v54 = vmin.f32 %v1467_v48, 0.0  ;;  %v1472_v55 = vmin.f32 %v1468_v51, 0.0  ;;  %vm1469_vm2 = vcmp.gt.f32.partialorder %v1467_v48, 0.0  ;;  %vm1470_vm3 = vcmp.gt.f32.partialorder %v1468_v51, 0.0 }
 0x42f   :  { %v2584_v57 = vpop.eup %2583  ;;  %v1859_v23 = vadd.f32 -1.0, %v2582_v52 }
 0x430   :  { %v1860_v0 = vadd.f32 -1.0, %v2584_v57  ;;  %v1473_v32 = vmul.f32 1.442695, %v1471_v54  ;;  %v1475_v42 = vmul.f32 1.442695, %v1472_v55 }
 0x431   :  { %v1342_v61 = vsel %vm1332_vm15, %v1330_v44, %v1859_v23 }
 0x432   :  { %v1343_v46 = vsel %vm1333_vm0, %v1331_v38, %v1860_v0  ;;  %1344 = vst [vmem:[#allocation3 + $0x1] sm:$0xff] %v1342_v61  ;;  %2585 = vpow2.f32 %v1473_v32 }
 0x433   :  { %1345 = vst [vmem:[#allocation3 + $0x9] sm:$0xff] %v1343_v46  ;;  %2587 = vpow2.f32 %v1475_v42  ;;  %v1863_v42 = vld [vmem:[%s3243_s0 + $0x10] sm:$0xff] }
 0x439   :  { %v1483_v26 = vld [vmem:[#allocation3] sm:$0xff] }
 0x43a   :  { %v1484_v4 = vld [vmem:[#allocation3 + $0x8] sm:$0xff]  ;;  %v1498_v39 = vrot.slane %v1483_v26, 1  ;;  %v1518_v50 = vrot.slane %v1483_v26, 2  ;;  %v1485_v58 = vld [vmem:[#allocation3 + $0x10] sm:$0xff] }
 0x43b   :  { %v1499_v62 = vrot.slane %v1484_v4, 1  ;;  %v1519_v53 = vrot.slane %v1484_v4, 2  ;;  %v1521_v63 = vrot.slane %v1485_v58, 2  ;;  %v1501_v1 = vrot.slane %v1485_v58, 1 }
 0x43c   :  { %v2586_v2 = vpop.eup %2585 }
 0x43d   :  { %v2588_v5 = vpop.eup %2587  ;;  %v1861_v6 = vadd.f32 -1.0, %v2586_v2  ;;  %v1500_v59 = vsel %vm188_vm10, %v1498_v39, %v1499_v62  ;;  %v1520_v8 = vsel %vm1517_vm1, %v1518_v50, %v1519_v53  ;;  %v1522_v60 = vsel %vm1517_vm1, %v1519_v53, %v1521_v63  ;;  %v1864_v50 = vld [vmem:[%s3243_s0 + $0x18] sm:$0xff] }
 0x43e   :  { %v1862_v9 = vadd.f32 -1.0, %v2588_v5  ;;  %1649 = vmatprep.mubr.f32.mxu0 %v1500_v59  ;;  %2333 = vmatprep.mubr.f32.mxu1 %v1520_v8  ;;  %v1502_v12 = vsel %vm188_vm10, %v1499_v62, %v1501_v1 }
 0x43f   :  { %v1479_v10 = vsel %vm1469_vm2, %v1467_v48, %v1861_v6  ;;  %1650 = vmatmul.mubr.f32.vlgmr.msra.gmra.mrb[28].mxu0 %v1483_v26  ;;  %2334 = vmatmul.mubr.f32.vlgmr.msra.gmra.mrb[28].mxu1 %v1522_v60 }
 0x440   :  { %v1480_v13 = vsel %vm1470_vm3, %v1468_v51, %v1862_v9  ;;  %1481 = vst [vmem:[#allocation3 + $0x19] sm:$0xff] %v1479_v10  ;;  %1654 = vmatprep.mubr.f32.mxu0 %v1502_v12 }
 0x441   :  { %1482 = vst [vmem:[#allocation3 + $0x21] sm:$0xff] %v1480_v13 }
 0x443   :  { %1655 = vmatmul.mubr.f32.gmra.mrb[30].mxu0 %v1484_v4 }
 0x447   :  { %v1486_v14 = vld [vmem:[#allocation3 + $0x18] sm:$0xff] }
 0x448   :  { %v1503_v15 = vrot.slane %v1486_v14, 1  ;;  %v1523_v16 = vrot.slane %v1486_v14, 2  ;;  %v1487_v17 = vld [vmem:[#allocation3 + $0x20] sm:$0xff]  ;;  %v1488_v18 = vld [vmem:[#allocation3 + $0x28] sm:$0xff] }
 0x449   :  { %v1525_v19 = vrot.slane %v1487_v17, 2  ;;  %v1505_v20 = vrot.slane %v1487_v17, 1  ;;  %v1527_v21 = vrot.slane %v1488_v18, 2  ;;  %v1507_v28 = vrot.slane %v1488_v18, 1 }
 0x44a   :  { %v1504_v22 = vsel %vm188_vm10, %v1501_v1, %v1503_v15  ;;  %v1524_v7 = vsel %vm1517_vm1, %v1521_v63, %v1523_v16 }
 0x44b   :  { %1659 = vmatprep.mubr.f32.mxu0 %v1504_v22  ;;  %2336 = vmatprep.mubr.f32.mxu1 %v1524_v7  ;;  %v1526_v11 = vsel %vm1517_vm1, %v1523_v16, %v1525_v19  ;;  %v1506_v25 = vsel %vm188_vm10, %v1503_v15, %v1505_v20  ;;  %v1528_v27 = vsel %vm1517_vm1, %v1525_v19, %v1527_v21 }
 0x44c   :  { %1660 = vmatmul.mubr.f32.gmra.mrb[32].mxu0 %v1485_v58  ;;  %2337 = vmatmul.mubr.f32.gmra.mrb[30].mxu1 %v1526_v11  ;;  %v1530_v29 = vsel %vm1517_vm1, %v1527_v21, %v1529_v24  ;;  %v1508_v30 = vsel %vm188_vm10, %v1505_v20, %v1507_v28  ;;  %v1510_v34 = vsel %vm188_vm10, %v1507_v28, %v1509_v33 }
 0x44d   :  { %1663 = vmatprep.mubr.f32.mxu0 %v1506_v25  ;;  %2339 = vmatprep.mubr.f32.mxu1 %v1528_v27 }
 0x450   :  { %1664 = vmatmul.mubr.f32.gmra.mrb[34].mxu0 %v1486_v14  ;;  %2340 = vmatmul.mubr.f32.gmra.mrb[32].mxu1 %v1530_v29 }
 0x451   :  { %1668 = vmatprep.mubr.f32.mxu0 %v1508_v30 }
 0x454   :  { %1669 = vmatmul.mubr.f32.gmra.mrb[36].mxu0 %v1487_v17 }
 0x455   :  { %1673 = vmatprep.mubr.f32.mxu0 %v1510_v34 }
 0x458   :  { %1674 = vmatmul.mubr.f32.gmra.mrb[38].mxu0 %v1488_v18 }
 0x512   :  { %v2065_v35 = vpop.f32.mrb[28].mxu0  ;;  %v2335_v36 = vpop.f32.mrb[28].mxu1 }
 0x513   :  { %v2066_v44 = vpop.f32.mrb[29].mxu0  ;;  %v1744_v38 = vpop.f32.mrb[29].mxu1 }
 0x514   :  { %v2067_v37 = vadd.f32 %v2066_v44, %v2065_v35 }
 0x516   :  { %v1745_v47 = vadd.f32 %v2067_v37, %v1744_v38  ;;  %v2068_v49 = vpop.f32.mrb[30].mxu0 }
 0x517   :  { %v2069_v40 = vpop.f32.mrb[31].mxu0 }
 0x518   :  { %v1773_v43 = vadd.f32 %v1771_v31, %v1745_v47  ;;  %v2070_v41 = vadd.f32 %v2069_v40, %v2068_v49 }
 0x51a   :  { %1775 = vst [vmem:[%s3248_s5] sm:$0xff] %v1773_v43  ;;  %v1750_v3 = vadd.f32 %v2335_v36, %v2070_v41 }
 0x51c   :  { %v1774_v56 = vadd.f32 %v1772_v45, %v1750_v3 }
 0x51e   :  { %1776 = vst [vmem:[%s3248_s5 + $0x8] sm:$0xff] %v1774_v56 }
 0x51f   :  { %v2071_v48 = vpop.f32.mrb[32].mxu0  ;;  %v2338_v51 = vpop.f32.mrb[30].mxu1 }
 0x520   :  { %v2072_v52 = vpop.f32.mrb[33].mxu0  ;;  %v1754_v54 = vpop.f32.mrb[31].mxu1 }
 0x523   :  { %v2074_v55 = vpop.f32.mrb[34].mxu0  ;;  %v2341_v57 = vpop.f32.mrb[32].mxu1 }
 0x524   :  { %v2075_v23 = vpop.f32.mrb[35].mxu0  ;;  %v1763_v0 = vpop.f32.mrb[33].mxu1 }
 0x525   :  { %v2076_v32 = vadd.f32 %v2075_v23, %v2074_v55 }
 0x527   :  { %v1759_v61 = vadd.f32 %v2338_v51, %v2076_v32  ;;  %v2077_v46 = vpop.f32.mrb[36].mxu0 }
 0x528   :  { %v2078_v26 = vpop.f32.mrb[37].mxu0 }
 0x529   :  { %v1779_v4 = vadd.f32 %v1863_v42, %v1759_v61  ;;  %v2079_v39 = vadd.f32 %v2078_v26, %v2077_v46 }
 0x52b   :  { %1865 = vst [vmem:[%s3248_s5 + $0x10] sm:$0xff] %v1779_v4  ;;  %v1764_v58 = vadd.f32 %v2079_v39, %v1763_v0  ;;  %v2080_v62 = vpop.f32.mrb[38].mxu0 }
 0x52c   :  { %v2081_v53 = vpop.f32.mrb[39].mxu0 }
 0x52d   :  { %v1780_v63 = vadd.f32 %v1864_v50, %v1764_v58 }
 0x52f   :  { %1866 = vst [vmem:[%s3248_s5 + $0x18] sm:$0xff] %v1780_v63 }
 0x530   :  { %1788 = vsyncpa [#allocation5], 1 }

</bundles_post_ra>
